<compile_context>
chip_gen: v5e
topology: v5e:2x2
jax: 0.10.0
libtpu: 0.0.40
codegen_flags: <defaults>
</compile_context>

<pallas_src>
import functools

import jax
import jax.numpy as jnp
import numpy as np
from jax import lax
from jax.experimental import pallas as pl
from jax.experimental.pallas import tpu as pltpu


def _round_up(a, b):
    return (a + b - 1) // b * b


def _cdiv(a, b):
    return (a + b - 1) // b


def _mgfr_kernel(xpad_ref, mask_ref, ind_ref, w1_ref, b1_ref, w2_ref, b2_ref,
                 wconv_ref, out_ref, *, C, H, W, Bt, S_b):
    Wp = W + 2
    Ltot = Bt * S_b

    ind = ind_ref[...]                             # (Bt, Ltot), constant-resident
    m = mask_ref[...].astype(jnp.float32)          # (1, Ltot)

    # Centre tap (dy=dx=1) of the padded slab IS x (pads/filler are zero).
    c0 = Wp + 1
    x = xpad_ref[:, c0:c0 + Ltot].astype(jnp.float32)        # (C, Ltot)

    # ---- 3x3 conv: nine accumulating (C,C)@(C,Ltot) MXU dots on ref slices
    #      (no tap concatenation scratch; taps read the resident VMEM block).
    spa = jnp.zeros((C, Ltot), jnp.float32)
    for t in range(9):
        dy, dx = divmod(t, 3)
        off = dy * Wp + dx
        tap = xpad_ref[:, off:off + Ltot].astype(jnp.float32)
        spa = spa + jnp.dot(wconv_ref[:, t * C:(t + 1) * C], tap,
                            preferred_element_type=jnp.float32)
    spa = jnp.maximum(spa, 0.0)

    # ---- per-batch global average pooling via indicator matmuls ----
    dims = (((1,), (1,)), ((), ()))
    pooled_x = lax.dot_general(x, ind, dims,
                               preferred_element_type=jnp.float32)   # (C, Bt)
    pooled_xm = lax.dot_general(x * m, ind, dims,
                                preferred_element_type=jnp.float32)  # (C, Bt)
    inv_hw = 1.0 / float(H * W)
    pooled = jnp.concatenate([pooled_x, pooled_x - pooled_xm], axis=0) * inv_hw

    # ---- fused excitation MLPs (block-diagonal weights, built host-side) ----
    h = jnp.maximum(
        jnp.dot(w1_ref[...], pooled, preferred_element_type=jnp.float32)
        + b1_ref[...], 0.0)                              # (2*HID, Bt)
    s = jax.nn.sigmoid(
        jnp.dot(w2_ref[...], h, preferred_element_type=jnp.float32)
        + b2_ref[...])                                   # (2C, Bt)
    scale = s[:C] * s[C:]                                # (C, Bt) = chn_x * chn_y

    # per-batch channel-scale slab via tiny matmul (no relayout)
    slab = jnp.dot(scale, ind, preferred_element_type=jnp.float32)   # (C, Ltot)

    # ---- out = x * spa_se_x * (chn_se_x * chn_se_y); lane-dense store ----
    out_ref[...] = (x * spa * slab).astype(out_ref.dtype)


def nearest_resize(m, H, W):
    # F.interpolate(mode='nearest'): src = floor(dst * in/out)
    B, C1, mh, mw = m.shape
    ih = jnp.floor(jnp.arange(H) * (mh / H)).astype(jnp.int32)
    iw = jnp.floor(jnp.arange(W) * (mw / W)).astype(jnp.int32)
    return m[:, :, ih, :][:, :, :, iw]


def _vmem_policy():
    """Generation-aware (budget_bytes, vmem_limit_cap, prefer_even_grid)."""
    try:
        cap = int(pltpu.get_tpu_info().vmem_capacity_bytes)
    except Exception:
        cap = 128 << 20
    if cap <= (64 << 20):       # v7x-class: 64 MiB per TC, 2 TCs share the grid
        return 28 << 20, 40 << 20, True
    return 80 << 20, 100 << 20, False   # v5e / v6e: 128 MiB VMEM


def mask_guided_feature_reweigh(x, mask, params, *, vmem_budget_bytes=None):
    B, C, H, W = x.shape
    Hp, Wp = H + 2, W + 2
    S_b = _round_up(Hp * Wp, 128)        # lane-dense per-batch stride
    E = _round_up(2 * Wp + 2, 128)       # tap halo past the last batch of a tile
    assert E >= 2 * Wp + 2               # last batch's taps stay inside the block
    HID = params["w1x"].shape[0]

    budget, limit_cap, prefer_even_T = _vmem_policy()
    if vmem_budget_bytes is not None:
        budget = vmem_budget_bytes

    # ---- VMEM usage model for a tile of Bt batches ----
    def step_bytes(bt):
        ltot = bt * S_b
        lin = ltot + E
        f = 4
        io = 2 * f * (C * lin + ltot + C * ltot)           # x / mask / out, x2 bufs
        const_blocks = 2 * f * (bt * ltot                  # indicator
                                + 2 * (2 * HID) * (2 * C)  # w1 + w2
                                + 2 * HID + 2 * C          # b1 + b2
                                + 9 * C * C)               # wconv
        scratch = f * ltot * (6 * C + 2)  # x, x*m, tap, spa, slab, out-val, mask
        return io + const_blocks + scratch + (2 << 20)

    # ---- pick batches per grid step: largest Bt under budget, no divisor
    #      constraint (tail tile zero-padded); prefer an even grid on 2-TC parts.
    cands = [bt for bt in range(B, 0, -1) if step_bytes(bt) <= budget] or [1]
    Bt = cands[0]
    if prefer_even_T and B >= 2:
        even = [bt for bt in cands if _cdiv(B, bt) % 2 == 0]
        if even:
            Bt = even[0]
    T = _cdiv(B, Bt)
    Bp = T * Bt
    Ltot = Bt * S_b
    Lin = Ltot + E

    # ---- layout plumbing (pure XLA): pad, flatten, lane-stack batches ----
    m = nearest_resize(mask, H, W).astype(jnp.float32)              # (B,1,H,W)
    if Bp != B:
        x = jnp.pad(x, ((0, Bp - B), (0, 0), (0, 0), (0, 0)))
        m = jnp.pad(m, ((0, Bp - B), (0, 0), (0, 0), (0, 0)))

    m_p = jnp.pad(m, ((0, 0), (0, 0), (0, 0), (0, 2))).reshape(Bp, 1, H * Wp)
    m_p = jnp.pad(m_p, ((0, 0), (0, 0), (0, S_b - H * Wp)))         # (Bp,1,S_b)
    m_t = m_p.reshape(T, Bt, 1, S_b).transpose(0, 2, 1, 3).reshape(T, 1, Ltot)

    xp = jnp.pad(x, ((0, 0), (0, 0), (1, 1), (1, 1))).reshape(Bp, C, Hp * Wp)
    xp = jnp.pad(xp, ((0, 0), (0, 0), (0, S_b - Hp * Wp)))          # (Bp,C,S_b)
    xp = xp.reshape(T, Bt, C, S_b).transpose(0, 2, 1, 3).reshape(T, C, Ltot)
    xp = jnp.pad(xp, ((0, 0), (0, 0), (0, E)))                      # (T,C,Lin)

    # per-batch indicator for pooling / broadcast (built once, DMA'd once)
    ind = jnp.repeat(jnp.eye(Bt, dtype=jnp.float32), S_b, axis=1)   # (Bt, Ltot)

    f32 = lambda a: a.astype(jnp.float32)
    z1 = jnp.zeros((HID, C), jnp.float32)
    z2 = jnp.zeros((C, HID), jnp.float32)
    w1 = jnp.block([[f32(params["w1x"]), z1], [z1, f32(params["w1y"])]])
    b1 = jnp.concatenate([f32(params["b1x"]), f32(params["b1y"])]).reshape(-1, 1)
    w2 = jnp.block([[f32(params["w2x"]), z2], [z2, f32(params["w2y"])]])
    b2 = jnp.concatenate([f32(params["b2x"]), f32(params["b2y"])]).reshape(-1, 1)
    # (Cout, Cin, 3, 3) -> (Cout, 9*Cin), tap-major (dy, dx), Cin inner
    wflat = f32(params["wconv"]).transpose(0, 2, 3, 1).reshape(C, 9 * C)

    kernel = functools.partial(_mgfr_kernel, C=C, H=H, W=W, Bt=Bt, S_b=S_b)

    def const(shape):
        n = len(shape)
        return pl.BlockSpec(shape, lambda *a, n=n: (0,) * n)

    vmem_limit = int(min(max(step_bytes(Bt) + (8 << 20), 16 << 20), limit_cap))

    out_flat = pl.pallas_call(
        kernel,
        out_shape=jax.ShapeDtypeStruct((T, C, Ltot), x.dtype),
        grid=(T,),
        in_specs=[
            pl.BlockSpec((None, C, Lin), lambda t: (t, 0, 0)),
            pl.BlockSpec((None, 1, Ltot), lambda t: (t, 0, 0)),
            const((Bt, Ltot)),
            const((2 * HID, 2 * C)), const((2 * HID, 1)),
            const((2 * C, 2 * HID)), const((2 * C, 1)),
            const((C, 9 * C)),
        ],
        out_specs=pl.BlockSpec((None, C, Ltot), lambda t: (t, 0, 0)),
        compiler_params=pltpu.CompilerParams(
            dimension_semantics=("parallel",),
            vmem_limit_bytes=vmem_limit),
    )(xp, m_t, ind, w1, b1, w2, b2, wflat)

    # ---- back to NCHW (drop pad columns / filler lanes / batch padding) ----
    o = out_flat.reshape(T, C, Bt, S_b).transpose(0, 2, 1, 3).reshape(Bp, C, S_b)
    return o[:B, :, :H * Wp].reshape(B, C, H, Wp)[:, :, :, :W]


def ref_forward(x, mask, params):
    """Plain-JAX reference mirroring the PyTorch forward."""
    m = nearest_resize(mask, *x.shape[2:])
    y = x * (1.0 - m)

    def excite(t, w1, b1, w2, b2):
        p = jnp.mean(t, axis=(2, 3))                      # (B, C)
        h = jax.nn.relu(p @ w1.T + b1)
        s = jax.nn.sigmoid(h @ w2.T + b2)
        return s[:, :, None, None]

    sx = excite(x, params["w1x"], params["b1x"], params["w2x"], params["b2x"])
    sy = excite(y, params["w1y"], params["b1y"], params["w2y"], params["b2y"])
    spa = jax.nn.relu(lax.conv_general_dilated(
        x, params["wconv"], window_strides=(1, 1), padding="SAME",
        dimension_numbers=("NCHW", "OIHW", "NCHW")))
    return x * sx * spa * sy


if __name__ == "__main__":
    B, C, H, W = 2, 4, 16, 16
    mh, mw = 8, 8
    EXP = 16
    HID = C * EXP

    key = jax.random.PRNGKey(0)
    ks = jax.random.split(key, 12)
    params = {
        "w1x": 0.1 * jax.random.normal(ks[0], (HID, C), jnp.float32),
        "b1x": 0.1 * jax.random.normal(ks[1], (HID,), jnp.float32),
        "w2x": 0.1 * jax.random.normal(ks[2], (C, HID), jnp.float32),
        "b2x": 0.1 * jax.random.normal(ks[3], (C,), jnp.float32),
        "w1y": 0.1 * jax.random.normal(ks[4], (HID, C), jnp.float32),
        "b1y": 0.1 * jax.random.normal(ks[5], (HID,), jnp.float32),
        "w2y": 0.1 * jax.random.normal(ks[6], (C, HID), jnp.float32),
        "b2y": 0.1 * jax.random.normal(ks[7], (C,), jnp.float32),
        "wconv": 0.1 * jax.random.normal(ks[8], (C, C, 3, 3), jnp.float32),
        # NOTE: self.spatial_se_y (Conv2d(C,1,1)) is defined in __init__ but
        # never used in forward(), so it is intentionally omitted.
    }

    x = jax.random.normal(ks[9], (B, C, H, W), jnp.float32)
    mask = (jax.random.uniform(ks[10], (B, 1, mh, mw)) > 0.5).astype(jnp.float32)

    out = jax.block_until_ready(mask_guided_feature_reweigh(x, mask, params))
    ref = ref_forward(x, mask, params)
    np.testing.assert_allclose(np.asarray(out), np.asarray(ref),
                               rtol=1e-4, atol=1e-4)
    print("KERNEL_OK")
</pallas_src>

<mosaic_0001>
module attributes {stable_mosaic.version = 11 : i64} {
  func.func @_mgfr_kernel(%arg0: i32, %arg1: memref<1x4x896xf32, #tpu.memory_space<vmem>>, %arg2: memref<1x1x768xf32, #tpu.memory_space<vmem>>, %arg3: memref<2x768xf32, #tpu.memory_space<vmem>>, %arg4: memref<128x8xf32, #tpu.memory_space<vmem>>, %arg5: memref<128x1xf32, #tpu.memory_space<vmem>>, %arg6: memref<8x128xf32, #tpu.memory_space<vmem>>, %arg7: memref<8x1xf32, #tpu.memory_space<vmem>>, %arg8: memref<4x36xf32, #tpu.memory_space<vmem>>, %arg9: memref<1x4x768xf32, #tpu.memory_space<vmem>>) attributes {dimension_semantics = [#tpu.dimension_semantics<parallel>], iteration_bounds = array<i64: 1>, scalar_prefetch = 0 : i64, scratch_operands = 0 : i64, tpu.core_type = #tpu.core_type<tc>, window_params = [{transform_indices = @transform_0, window_bounds = array<i64: 1, 4, 896>}, {transform_indices = @transform_1, window_bounds = array<i64: 1, 1, 768>}, {pipeline_mode = #tpu.pipeline_mode<synchronous>, transform_indices = @transform_2, window_bounds = array<i64: 2, 768>}, {pipeline_mode = #tpu.pipeline_mode<synchronous>, transform_indices = @transform_3, window_bounds = array<i64: 128, 8>}, {pipeline_mode = #tpu.pipeline_mode<synchronous>, transform_indices = @transform_4, window_bounds = array<i64: 128, 1>}, {pipeline_mode = #tpu.pipeline_mode<synchronous>, transform_indices = @transform_5, window_bounds = array<i64: 8, 128>}, {pipeline_mode = #tpu.pipeline_mode<synchronous>, transform_indices = @transform_6, window_bounds = array<i64: 8, 1>}, {pipeline_mode = #tpu.pipeline_mode<synchronous>, transform_indices = @transform_7, window_bounds = array<i64: 4, 36>}, {transform_indices = @transform_8, window_bounds = array<i64: 1, 4, 768>}]} {
    %c0 = arith.constant 0 : index
    %c0_0 = arith.constant 0 : index
    %0 = vector.load %arg3[%c0, %c0_0] : memref<2x768xf32, #tpu.memory_space<vmem>>, vector<2x768xf32>
    %c0_1 = arith.constant 0 : index
    %c0_2 = arith.constant 0 : index
    %c0_3 = arith.constant 0 : index
    %1 = vector.load %arg2[%c0_1, %c0_2, %c0_3] : memref<1x1x768xf32, #tpu.memory_space<vmem>>, vector<1x1x768xf32>
    %2 = vector.shape_cast %1 : vector<1x1x768xf32> to vector<1x768xf32>
    %c0_4 = arith.constant 0 : index
    %c0_5 = arith.constant 0 : index
    %c19 = arith.constant 19 : index
    %3 = vector.load %arg1[%c0_4, %c0_5, %c19] : memref<1x4x896xf32, #tpu.memory_space<vmem>>, vector<1x4x768xf32>
    %4 = vector.shape_cast %3 : vector<1x4x768xf32> to vector<4x768xf32>
    %cst = arith.constant 0.000000e+00 : f32
    %5 = vector.broadcast %cst : f32 to vector<4x768xf32>
    %c0_6 = arith.constant 0 : index
    %c0_7 = arith.constant 0 : index
    %c0_8 = arith.constant 0 : index
    %6 = vector.load %arg1[%c0_6, %c0_7, %c0_8] : memref<1x4x896xf32, #tpu.memory_space<vmem>>, vector<1x4x768xf32>
    %7 = vector.shape_cast %6 : vector<1x4x768xf32> to vector<4x768xf32>
    %c0_9 = arith.constant 0 : index
    %c0_10 = arith.constant 0 : index
    %8 = vector.load %arg8[%c0_9, %c0_10] : memref<4x36xf32, #tpu.memory_space<vmem>>, vector<4x4xf32>
    %cst_11 = arith.constant dense<0.000000e+00> : vector<4x768xf32>
    %9 = tpu.matmul %8, %7, %cst_11 {dimension_numbers = #tpu.dot_dimension_numbers<[1], [0], [0], [1], [0, 0, 1, 1], [], []>} : vector<4x4xf32>, vector<4x768xf32>, vector<4x768xf32> -> vector<4x768xf32>
    %10 = arith.addf %5, %9 : vector<4x768xf32>
    %c0_12 = arith.constant 0 : index
    %c0_13 = arith.constant 0 : index
    %c1 = arith.constant 1 : index
    %11 = vector.load %arg1[%c0_12, %c0_13, %c1] : memref<1x4x896xf32, #tpu.memory_space<vmem>>, vector<1x4x768xf32>
    %12 = vector.shape_cast %11 : vector<1x4x768xf32> to vector<4x768xf32>
    %c0_14 = arith.constant 0 : index
    %c4 = arith.constant 4 : index
    %13 = vector.load %arg8[%c0_14, %c4] : memref<4x36xf32, #tpu.memory_space<vmem>>, vector<4x4xf32>
    %cst_15 = arith.constant dense<0.000000e+00> : vector<4x768xf32>
    %14 = tpu.matmul %13, %12, %cst_15 {dimension_numbers = #tpu.dot_dimension_numbers<[1], [0], [0], [1], [0, 0, 1, 1], [], []>} : vector<4x4xf32>, vector<4x768xf32>, vector<4x768xf32> -> vector<4x768xf32>
    %15 = arith.addf %10, %14 : vector<4x768xf32>
    %c0_16 = arith.constant 0 : index
    %c0_17 = arith.constant 0 : index
    %c2 = arith.constant 2 : index
    %16 = vector.load %arg1[%c0_16, %c0_17, %c2] : memref<1x4x896xf32, #tpu.memory_space<vmem>>, vector<1x4x768xf32>
    %17 = vector.shape_cast %16 : vector<1x4x768xf32> to vector<4x768xf32>
    %c0_18 = arith.constant 0 : index
    %c8 = arith.constant 8 : index
    %18 = vector.load %arg8[%c0_18, %c8] : memref<4x36xf32, #tpu.memory_space<vmem>>, vector<4x4xf32>
    %cst_19 = arith.constant dense<0.000000e+00> : vector<4x768xf32>
    %19 = tpu.matmul %18, %17, %cst_19 {dimension_numbers = #tpu.dot_dimension_numbers<[1], [0], [0], [1], [0, 0, 1, 1], [], []>} : vector<4x4xf32>, vector<4x768xf32>, vector<4x768xf32> -> vector<4x768xf32>
    %20 = arith.addf %15, %19 : vector<4x768xf32>
    %c0_20 = arith.constant 0 : index
    %c0_21 = arith.constant 0 : index
    %c18 = arith.constant 18 : index
    %21 = vector.load %arg1[%c0_20, %c0_21, %c18] : memref<1x4x896xf32, #tpu.memory_space<vmem>>, vector<1x4x768xf32>
    %22 = vector.shape_cast %21 : vector<1x4x768xf32> to vector<4x768xf32>
    %c0_22 = arith.constant 0 : index
    %c12 = arith.constant 12 : index
    %23 = vector.load %arg8[%c0_22, %c12] : memref<4x36xf32, #tpu.memory_space<vmem>>, vector<4x4xf32>
    %cst_23 = arith.constant dense<0.000000e+00> : vector<4x768xf32>
    %24 = tpu.matmul %23, %22, %cst_23 {dimension_numbers = #tpu.dot_dimension_numbers<[1], [0], [0], [1], [0, 0, 1, 1], [], []>} : vector<4x4xf32>, vector<4x768xf32>, vector<4x768xf32> -> vector<4x768xf32>
    %25 = arith.addf %20, %24 : vector<4x768xf32>
    %c0_24 = arith.constant 0 : index
    %c0_25 = arith.constant 0 : index
    %c19_26 = arith.constant 19 : index
    %26 = vector.load %arg1[%c0_24, %c0_25, %c19_26] : memref<1x4x896xf32, #tpu.memory_space<vmem>>, vector<1x4x768xf32>
    %27 = vector.shape_cast %26 : vector<1x4x768xf32> to vector<4x768xf32>
    %c0_27 = arith.constant 0 : index
    %c16 = arith.constant 16 : index
    %28 = vector.load %arg8[%c0_27, %c16] : memref<4x36xf32, #tpu.memory_space<vmem>>, vector<4x4xf32>
    %cst_28 = arith.constant dense<0.000000e+00> : vector<4x768xf32>
    %29 = tpu.matmul %28, %27, %cst_28 {dimension_numbers = #tpu.dot_dimension_numbers<[1], [0], [0], [1], [0, 0, 1, 1], [], []>} : vector<4x4xf32>, vector<4x768xf32>, vector<4x768xf32> -> vector<4x768xf32>
    %30 = arith.addf %25, %29 : vector<4x768xf32>
    %c0_29 = arith.constant 0 : index
    %c0_30 = arith.constant 0 : index
    %c20 = arith.constant 20 : index
    %31 = vector.load %arg1[%c0_29, %c0_30, %c20] : memref<1x4x896xf32, #tpu.memory_space<vmem>>, vector<1x4x768xf32>
    %32 = vector.shape_cast %31 : vector<1x4x768xf32> to vector<4x768xf32>
    %c0_31 = arith.constant 0 : index
    %c20_32 = arith.constant 20 : index
    %33 = vector.load %arg8[%c0_31, %c20_32] : memref<4x36xf32, #tpu.memory_space<vmem>>, vector<4x4xf32>
    %cst_33 = arith.constant dense<0.000000e+00> : vector<4x768xf32>
    %34 = tpu.matmul %33, %32, %cst_33 {dimension_numbers = #tpu.dot_dimension_numbers<[1], [0], [0], [1], [0, 0, 1, 1], [], []>} : vector<4x4xf32>, vector<4x768xf32>, vector<4x768xf32> -> vector<4x768xf32>
    %35 = arith.addf %30, %34 : vector<4x768xf32>
    %c0_34 = arith.constant 0 : index
    %c0_35 = arith.constant 0 : index
    %c36 = arith.constant 36 : index
    %36 = vector.load %arg1[%c0_34, %c0_35, %c36] : memref<1x4x896xf32, #tpu.memory_space<vmem>>, vector<1x4x768xf32>
    %37 = vector.shape_cast %36 : vector<1x4x768xf32> to vector<4x768xf32>
    %c0_36 = arith.constant 0 : index
    %c24 = arith.constant 24 : index
    %38 = vector.load %arg8[%c0_36, %c24] : memref<4x36xf32, #tpu.memory_space<vmem>>, vector<4x4xf32>
    %cst_37 = arith.constant dense<0.000000e+00> : vector<4x768xf32>
    %39 = tpu.matmul %38, %37, %cst_37 {dimension_numbers = #tpu.dot_dimension_numbers<[1], [0], [0], [1], [0, 0, 1, 1], [], []>} : vector<4x4xf32>, vector<4x768xf32>, vector<4x768xf32> -> vector<4x768xf32>
    %40 = arith.addf %35, %39 : vector<4x768xf32>
    %c0_38 = arith.constant 0 : index
    %c0_39 = arith.constant 0 : index
    %c37 = arith.constant 37 : index
    %41 = vector.load %arg1[%c0_38, %c0_39, %c37] : memref<1x4x896xf32, #tpu.memory_space<vmem>>, vector<1x4x768xf32>
    %42 = vector.shape_cast %41 : vector<1x4x768xf32> to vector<4x768xf32>
    %c0_40 = arith.constant 0 : index
    %c28 = arith.constant 28 : index
    %43 = vector.load %arg8[%c0_40, %c28] : memref<4x36xf32, #tpu.memory_space<vmem>>, vector<4x4xf32>
    %cst_41 = arith.constant dense<0.000000e+00> : vector<4x768xf32>
    %44 = tpu.matmul %43, %42, %cst_41 {dimension_numbers = #tpu.dot_dimension_numbers<[1], [0], [0], [1], [0, 0, 1, 1], [], []>} : vector<4x4xf32>, vector<4x768xf32>, vector<4x768xf32> -> vector<4x768xf32>
    %45 = arith.addf %40, %44 : vector<4x768xf32>
    %c0_42 = arith.constant 0 : index
    %c0_43 = arith.constant 0 : index
    %c38 = arith.constant 38 : index
    %46 = vector.load %arg1[%c0_42, %c0_43, %c38] : memref<1x4x896xf32, #tpu.memory_space<vmem>>, vector<1x4x768xf32>
    %47 = vector.shape_cast %46 : vector<1x4x768xf32> to vector<4x768xf32>
    %c0_44 = arith.constant 0 : index
    %c32 = arith.constant 32 : index
    %48 = vector.load %arg8[%c0_44, %c32] : memref<4x36xf32, #tpu.memory_space<vmem>>, vector<4x4xf32>
    %cst_45 = arith.constant dense<0.000000e+00> : vector<4x768xf32>
    %49 = tpu.matmul %48, %47, %cst_45 {dimension_numbers = #tpu.dot_dimension_numbers<[1], [0], [0], [1], [0, 0, 1, 1], [], []>} : vector<4x4xf32>, vector<4x768xf32>, vector<4x768xf32> -> vector<4x768xf32>
    %50 = arith.addf %45, %49 : vector<4x768xf32>
    %cst_46 = arith.constant 0.000000e+00 : f32
    %51 = vector.broadcast %cst_46 : f32 to vector<4x768xf32>
    %52 = arith.maximumf %50, %51 : vector<4x768xf32>
    %cst_47 = arith.constant dense<0.000000e+00> : vector<4x2xf32>
    %53 = tpu.matmul %4, %0, %cst_47 {dimension_numbers = #tpu.dot_dimension_numbers<[1], [1], [0], [0], [0, 0, 1, 0], [], []>} : vector<4x768xf32>, vector<2x768xf32>, vector<4x2xf32> -> vector<4x2xf32>
    %54 = vector.broadcast %2 : vector<1x768xf32> to vector<4x768xf32>
    %55 = arith.mulf %4, %54 : vector<4x768xf32>
    %cst_48 = arith.constant dense<0.000000e+00> : vector<4x2xf32>
    %56 = tpu.matmul %55, %0, %cst_48 {dimension_numbers = #tpu.dot_dimension_numbers<[1], [1], [0], [0], [0, 0, 1, 0], [], []>} : vector<4x768xf32>, vector<2x768xf32>, vector<4x2xf32> -> vector<4x2xf32>
    %57 = arith.subf %53, %56 : vector<4x2xf32>
    %58 = tpu.concatenate %53, %57 in 0 : vector<4x2xf32>, vector<4x2xf32> -> vector<8x2xf32>
    %cst_49 = arith.constant 3.906250e-03 : f32
    %59 = vector.broadcast %cst_49 : f32 to vector<8x2xf32>
    %60 = arith.mulf %58, %59 : vector<8x2xf32>
    %c0_50 = arith.constant 0 : index
    %c0_51 = arith.constant 0 : index
    %61 = vector.load %arg4[%c0_50, %c0_51] : memref<128x8xf32, #tpu.memory_space<vmem>>, vector<128x8xf32>
    %cst_52 = arith.constant dense<0.000000e+00> : vector<128x2xf32>
    %62 = tpu.matmul %61, %60, %cst_52 {dimension_numbers = #tpu.dot_dimension_numbers<[1], [0], [0], [1], [0, 0, 1, 1], [], []>} : vector<128x8xf32>, vector<8x2xf32>, vector<128x2xf32> -> vector<128x2xf32>
    %c0_53 = arith.constant 0 : index
    %c0_54 = arith.constant 0 : index
    %63 = vector.load %arg5[%c0_53, %c0_54] : memref<128x1xf32, #tpu.memory_space<vmem>>, vector<128x1xf32>
    %64 = vector.broadcast %63 : vector<128x1xf32> to vector<128x2xf32>
    %65 = arith.addf %62, %64 : vector<128x2xf32>
    %cst_55 = arith.constant 0.000000e+00 : f32
    %66 = vector.broadcast %cst_55 : f32 to vector<128x2xf32>
    %67 = arith.maximumf %65, %66 : vector<128x2xf32>
    %c0_56 = arith.constant 0 : index
    %c0_57 = arith.constant 0 : index
    %68 = vector.load %arg6[%c0_56, %c0_57] : memref<8x128xf32, #tpu.memory_space<vmem>>, vector<8x128xf32>
    %cst_58 = arith.constant dense<0.000000e+00> : vector<8x2xf32>
    %69 = tpu.matmul %68, %67, %cst_58 {dimension_numbers = #tpu.dot_dimension_numbers<[1], [0], [0], [1], [0, 0, 1, 1], [], []>} : vector<8x128xf32>, vector<128x2xf32>, vector<8x2xf32> -> vector<8x2xf32>
    %c0_59 = arith.constant 0 : index
    %c0_60 = arith.constant 0 : index
    %70 = vector.load %arg7[%c0_59, %c0_60] : memref<8x1xf32, #tpu.memory_space<vmem>>, vector<8x1xf32>
    %71 = vector.broadcast %70 : vector<8x1xf32> to vector<8x2xf32>
    %72 = arith.addf %69, %71 : vector<8x2xf32>
    %73 = arith.negf %72 : vector<8x2xf32>
    %74 = math.exp %73 : vector<8x2xf32>
    %cst_61 = arith.constant 1.000000e+00 : f32
    %75 = vector.broadcast %cst_61 : f32 to vector<8x2xf32>
    %76 = arith.addf %75, %74 : vector<8x2xf32>
    %77 = arith.divf %75, %76 : vector<8x2xf32>
    %78 = vector.extract_strided_slice %77 {offsets = [0, 0], sizes = [4, 2], strides = [1, 1]} : vector<8x2xf32> to vector<4x2xf32>
    %79 = vector.extract_strided_slice %77 {offsets = [4, 0], sizes = [4, 2], strides = [1, 1]} : vector<8x2xf32> to vector<4x2xf32>
    %80 = arith.mulf %78, %79 : vector<4x2xf32>
    %cst_62 = arith.constant dense<0.000000e+00> : vector<4x768xf32>
    %81 = tpu.matmul %80, %0, %cst_62 {dimension_numbers = #tpu.dot_dimension_numbers<[1], [0], [0], [1], [0, 0, 1, 1], [], []>} : vector<4x2xf32>, vector<2x768xf32>, vector<4x768xf32> -> vector<4x768xf32>
    %82 = arith.mulf %4, %52 : vector<4x768xf32>
    %83 = arith.mulf %82, %81 : vector<4x768xf32>
    %c0_63 = arith.constant 0 : index
    %c0_64 = arith.constant 0 : index
    %c0_65 = arith.constant 0 : index
    %84 = vector.load %arg9[%c0_63, %c0_64, %c0_65] : memref<1x4x768xf32, #tpu.memory_space<vmem>>, vector<1x4x768xf32>
    %85 = vector.shape_cast %84 : vector<1x4x768xf32> to vector<4x768xf32>
    %86 = vector.shape_cast %83 : vector<4x768xf32> to vector<1x4x768xf32>
    tpu.vector_store %arg9[%c0_63, %c0_64, %c0_65], %86 {strides = array<i32>} : memref<1x4x768xf32, #tpu.memory_space<vmem>>, vector<1x4x768xf32>,
    return
  }
  func.func @transform_0(%arg0: i32) -> (i32, i32, i32) {
    %c0_i32 = arith.constant 0 : i32
    %c0_i32_0 = arith.constant 0 : i32
    %c0_i32_1 = arith.constant 0 : i32
    return %arg0, %c0_i32, %c0_i32_0 : i32, i32, i32
  }
  func.func @transform_1(%arg0: i32) -> (i32, i32, i32) {
    %c0_i32 = arith.constant 0 : i32
    %c0_i32_0 = arith.constant 0 : i32
    %c0_i32_1 = arith.constant 0 : i32
    return %arg0, %c0_i32, %c0_i32_0 : i32, i32, i32
  }
  func.func @transform_2(%arg0: i32) -> (i32, i32) {
    %c0_i32 = arith.constant 0 : i32
    %c0_i32_0 = arith.constant 0 : i32
    %c0_i32_1 = arith.constant 0 : i32
    return %c0_i32, %c0_i32_0 : i32, i32
  }
  func.func @transform_3(%arg0: i32) -> (i32, i32) {
    %c0_i32 = arith.constant 0 : i32
    %c0_i32_0 = arith.constant 0 : i32
    %c0_i32_1 = arith.constant 0 : i32
    return %c0_i32, %c0_i32_0 : i32, i32
  }
  func.func @transform_4(%arg0: i32) -> (i32, i32) {
    %c0_i32 = arith.constant 0 : i32
    %c0_i32_0 = arith.constant 0 : i32
    %c0_i32_1 = arith.constant 0 : i32
    return %c0_i32, %c0_i32_0 : i32, i32
  }
  func.func @transform_5(%arg0: i32) -> (i32, i32) {
    %c0_i32 = arith.constant 0 : i32
    %c0_i32_0 = arith.constant 0 : i32
    %c0_i32_1 = arith.constant 0 : i32
    return %c0_i32, %c0_i32_0 : i32, i32
  }
  func.func @transform_6(%arg0: i32) -> (i32, i32) {
    %c0_i32 = arith.constant 0 : i32
    %c0_i32_0 = arith.constant 0 : i32
    %c0_i32_1 = arith.constant 0 : i32
    return %c0_i32, %c0_i32_0 : i32, i32
  }
  func.func @transform_7(%arg0: i32) -> (i32, i32) {
    %c0_i32 = arith.constant 0 : i32
    %c0_i32_0 = arith.constant 0 : i32
    %c0_i32_1 = arith.constant 0 : i32
    return %c0_i32, %c0_i32_0 : i32, i32
  }
  func.func @transform_8(%arg0: i32) -> (i32, i32, i32) {
    %c0_i32 = arith.constant 0 : i32
    %c0_i32_0 = arith.constant 0 : i32
    %c0_i32_1 = arith.constant 0 : i32
    return %arg0, %c0_i32, %c0_i32_0 : i32, i32, i32
  }
}

</mosaic_0001>

<bundles_post_ra>
// kernel: tpu_custom_call.1
= control target key start
LH: loop header
LB: loop body
LE: loop exit
PB: predicated region body
PF: predicated region fallthrough
CT: control target
= control target key end

     0   :  { %s2848_s11 = smov 124   ;;  %s3648_s0 = inlined_call_operand.vmem [shape: f32[1,4,896], index: 0, kind: input, shape index: {}]   ;;  %s3649_s1 = inlined_call_operand.vmem [shape: f32[1,1,768], index: 1, kind: input, shape index: {}]   ;;  %s3650_s2 = inlined_call_operand.vmem [shape: f32[2,768], index: 2, kind: input, shape index: {}]   ;;  %s3651_s3 = inlined_call_operand.vmem [shape: f32[128,8], index: 3, kind: input, shape index: {}]   ;;  %s3652_s4 = inlined_call_operand.vmem [shape: f32[128,1], index: 4, kind: input, shape index: {}]   ;;  %s3653_s5 = inlined_call_operand.vmem [shape: f32[8,128], index: 5, kind: input, shape index: {}]   ;;  %s3654_s6 = inlined_call_operand.vmem [shape: f32[8,1], index: 6, kind: input, shape index: {}]   ;;  %s3655_s7 = inlined_call_operand.vmem [shape: f32[4,36], index: 7, kind: input, shape index: {}]   ;;  %s3656_s8 = inlined_call_operand.hbm [shape: f32[1,4,768], index: 8, kind: output, shape index: {}]  }
   0x1   :  { %v2914_v0 = vld [vmem:[%s3655_s7] sm:$0xf]  ;;  %v2919_v1 = vld [vmem:[%s3648_s0 + $0x8] sm:$0xff]  ;;  %v2931_v3 = vld [vmem:[%s3648_s0 + $0x18] sm:$0xf] }
   0x2   :  { %v2924_v2 = vld [vmem:[%s3648_s0] sm:$0xff]  ;;  %42 = vrot.lane.b32.xlu1 %v2914_v0, %s2848_s11  ;;  %50 = vst [vmem:[#allocation1 + $0x10] ss:$2 sm:$0xff] %v2919_v1  ;;  %v2936_v4 = vld [vmem:[%s3648_s0 + $0x10] sm:$0xff] }
   0x3   :  { %48 = vst [vmem:[#allocation1] ss:$2 sm:$0xff] %v2924_v2 }
   0x4   :  { %54 = vst [vmem:[#allocation1 + $0x30] ss:$2 sm:$0xff] %v2931_v3 }
   0x5   :  { %13 = vsyncpa [#allocation3], 0  ;;  %52 = vst [vmem:[#allocation1 + $0x20] ss:$2 sm:$0xff] %v2936_v4  ;;  %s2849_s16 = smov 127   ;;  %s2850_s21 = smov 120  }
   0x6   :  { %v370_v11 = vld [vmem:[%s3648_s0 + $0x18] sm:$0xf]  ;;  %v371_v19 = vld [vmem:[%s3655_s7] sm:$0xf]  ;;  %s2851_s22 = smov 126   ;;  %s2852_s25 = smov 110  }
   0x7   :  { %v557_v30 = vld [vmem:[%s3648_s0 + $0x18] sm:$0xf]  ;;  %v558_v39 = vld [vmem:[%s3655_s7] sm:$0xf]  ;;  %s2853_s28 = smov 116   ;;  %s2854_s29 = smov 109  }
   0x8   :  { %v923_v48 = vld [vmem:[%s3648_s0 + $0x18] sm:$0xf]  ;;  %v741_v50 = vld [vmem:[%s3655_s7] sm:$0xf]  ;;  %s2855_s12 = smov 112   ;;  %s2856_s15 = smov 108  }
   0x9   :  { %v57_v5 = vld.sshfl [vmem:[#allocation1 + $0x10] sm:$0xff pattern:$0x75316420]  ;;  %v58_v6 = vld.sshfl [vmem:[#allocation1 + $0x18] sm:$0xff pattern:$0x75316420] }
   0xa   :  { %66 = vrot.lane.b32.xlu1 %v57_v5, %s2849_s16  ;;  %v55_v7 = vld.sshfl [vmem:[#allocation1] sm:$0xff pattern:$0x75316420]  ;;  %68 = vrot.lane.b32.xlu2 %v58_v6, %s2849_s16  ;;  %v56_v8 = vld.sshfl [vmem:[#allocation1 + $0x8] sm:$0xff pattern:$0x75316420] }
   0xb   :  { %62 = vrot.lane.b32.xlu0 %v55_v7, %s2849_s16  ;;  %224 = vst [vmem:[#allocation1 + $0x10] ss:$2 sm:$0xff] %v2919_v1  ;;  %v61_v12 = vld.sshfl [vmem:[#allocation1 + $0x30] sm:$0xff pattern:$0x75316420]  ;;  %vm86_vm0 = vcmask 1043456  }
   0xc   :  { %v59_v9 = vld.sshfl [vmem:[#allocation1 + $0x20] sm:$0xff pattern:$0x75316420]  ;;  %v60_v10 = vld.sshfl [vmem:[#allocation1 + $0x28] sm:$0xff pattern:$0x75316420] }
   0xd   :  { %226 = vst [vmem:[#allocation1 + $0x20] ss:$2 sm:$0xff] %v2936_v4  ;;  %v1110_v52 = vld [vmem:[%s3648_s0 + $0x18] sm:$0xf]  ;;  %v32_v55 = vld [vmem:[%s3649_s1] sm:$0x3f] }
   0xe   :  { %222 = vst [vmem:[#allocation1] ss:$2 sm:$0xff] %v2924_v2  ;;  %v1853_v56 = vperm.slane %v32_v55, 1  ;;  %v924_v57 = vld [vmem:[%s3655_s7] sm:$0xf]  ;;  %v1852_v58 = vperm.slane %v32_v55, 0 }
   0xf   :  { %385 = vst [vmem:[#allocation1 + $0x30] ss:$2 sm:$0xff] %v370_v11  ;;  %v1855_v62 = vperm.slane %v32_v55, 3  ;;  %s2857_s1 = smov 19   ;;  %vm76_vm1 = vcmask 1039360   ;;  %v1854_v6 = vperm.slane %v32_v55, 2 }
  0x10   :  { %v1858_v59 = vrot.slane %v1853_v56, 4  ;;  %s2858_s20 = smov 92   ;;  %vm83_vm2 = vcmask 31744   ;;  %s2860_s27 = smov 104   ;;  %vm407_vm3 = vcmask 1031168   ;;  %vm594_vm4 = vcmask 900096  }
  0x11   :  { %s2861_s9 = smov 100   ;;  %s2863_s13 = smov 90   ;;  %vm773_vm5 = vcmask 891904   ;;  %vm960_vm6 = vcmask 883712   ;;  %vm1873_vm7 = vcmask 154624   ;;  %vm1147_vm8 = vcmask 752640  }
  0x12   :  { %74 = vrot.lane.b32.xlu1 %v61_v12, %s2849_s16  ;;  %70 = vrot.lane.b32.xlu2 %v59_v9, %s2849_s16  ;;  %v2952_v13 = vld.sshfl [vmem:[#allocation1 + $0x10] sm:$0xff pattern:$0x75316420]  ;;  %v2954_v14 = vld.sshfl [vmem:[#allocation1 + $0x18] sm:$0xff pattern:$0x75316420]  ;;  %v1861_v61 = vsel %vm86_vm0, %v1852_v58, %v1858_v59 }
  0x13   :  { %64 = vrot.lane.b32.xlu0 %v56_v8, %s2849_s16  ;;  %381 = vst [vmem:[#allocation1 + $0x10] ss:$2 sm:$0xff] %v2919_v1  ;;  %v1859_v9 = vrot.slane %v1855_v62, 4  ;;  %v1857_v12 = vperm.slane %v32_v55, 5  ;;  %vm1334_vm9 = vcmask 744448   ;;  %vm1521_vm10 = vcmask 736256  }
  0x14   :  { %v2958_v15 = vld.sshfl [vmem:[#allocation1 + $0x20] sm:$0xff pattern:$0x75316420]  ;;  %v2960_v16 = vld.sshfl [vmem:[#allocation1 + $0x28] sm:$0xff pattern:$0x75316420] }
  0x15   :  { %383 = vst [vmem:[#allocation1 + $0x20] ss:$2 sm:$0xff] %v2936_v4  ;;  %v2963_v17 = vld.sshfl [vmem:[#allocation1] sm:$0xff pattern:$0x75316420]  ;;  %vm2184_vm11 = vcmask 64512  }
  0x16   :  { %v2965_v18 = vld.sshfl [vmem:[#allocation1 + $0x8] sm:$0xff pattern:$0x75316420]  ;;  %v392_v33 = vld.sshfl [vmem:[#allocation1 + $0x30] sm:$0xff pattern:$0x75316420] }
  0x17   :  { %379 = vst [vmem:[#allocation1] ss:$2 sm:$0xff] %v2924_v2  ;;  %vm2377_vm12 = vcmask 1041408   ;;  %s2613_s11 = sshll.u32 %s3656_s8, 4  ;;  %s2614_s11 = int_to_ptr.hbm [resolvable:$true] %s2613_s11 }
  0x18   :  { %572 = vst [vmem:[#allocation1 + $0x30] ss:$2 sm:$0xff] %v557_v30  ;;  %v1484_v30 = vld [vmem:[%s3648_s0 + $0x18] sm:$0xf] }
  0x1a   :  { %373 = vrot.lane.b32.xlu1 %v371_v19, %s2850_s21  ;;  %v388_v20 = vld.sshfl [vmem:[#allocation1 + $0x10] sm:$0xff pattern:$0x75316420]  ;;  %v389_v21 = vld.sshfl [vmem:[#allocation1 + $0x18] sm:$0xff pattern:$0x75316420]  ;;  %v1862_v19 = vsel %vm86_vm0, %v1854_v6, %v1859_v9 }
  0x1b   :  { %72 = vrot.lane.b32.xlu0 %v60_v10, %s2849_s16  ;;  %397 = vrot.lane.b32.xlu2 %v388_v20, %s2851_s22  ;;  %568 = vst [vmem:[#allocation1 + $0x10] ss:$2 sm:$0xff] %v2919_v1 }
  0x1c   :  { %v390_v22 = vld.sshfl [vmem:[#allocation1 + $0x20] sm:$0xff pattern:$0x75316420]  ;;  %v391_v23 = vld.sshfl [vmem:[#allocation1 + $0x28] sm:$0xff pattern:$0x75316420] }
  0x1d   :  { %570 = vst [vmem:[#allocation1 + $0x20] ss:$2 sm:$0xff] %v2936_v4 }
  0x1e   :  { %v387_v24 = vld.sshfl [vmem:[#allocation1 + $0x8] sm:$0xff pattern:$0x75316420]  ;;  %v386_v25 = vld.sshfl [vmem:[#allocation1] sm:$0xff pattern:$0x75316420] }
  0x1f   :  { %566 = vst [vmem:[#allocation1] ss:$2 sm:$0xff] %v2924_v2  ;;  %v579_v38 = vld.sshfl [vmem:[#allocation1 + $0x30] sm:$0xff pattern:$0x75316420] }
  0x20   :  { %751 = vst [vmem:[#allocation1 + $0x30] ss:$2 sm:$0xff] %v2931_v3 }
  0x22   :  { %401 = vrot.lane.b32.xlu1 %v390_v22, %s2851_s22  ;;  %v576_v26 = vld.sshfl [vmem:[#allocation1 + $0x18] sm:$0xff pattern:$0x75316420]  ;;  %v575_v27 = vld.sshfl [vmem:[#allocation1 + $0x10] sm:$0xff pattern:$0x75316420] }
  0x23   :  { %399 = vrot.lane.b32.xlu0 %v389_v21, %s2851_s22  ;;  %393 = vrot.lane.b32.xlu2 %v386_v25, %s2851_s22  ;;  %747 = vst [vmem:[#allocation1 + $0x10] ss:$2 sm:$0xff] %v2919_v1  ;;  %v1297_v21 = vld [vmem:[%s3648_s0 + $0x18] sm:$0xf]  ;;  %s2859_s0 = smov 91  }
  0x24   :  { %v578_v28 = vld.sshfl [vmem:[#allocation1 + $0x28] sm:$0xff pattern:$0x75316420]  ;;  %v577_v29 = vld.sshfl [vmem:[#allocation1 + $0x20] sm:$0xff pattern:$0x75316420] }
  0x25   :  { %749 = vst [vmem:[#allocation1 + $0x20] ss:$2 sm:$0xff] %v2936_v4 }
  0x26   :  { %v574_v31 = vld.sshfl [vmem:[#allocation1 + $0x8] sm:$0xff pattern:$0x75316420]  ;;  %v573_v32 = vld.sshfl [vmem:[#allocation1] sm:$0xff pattern:$0x75316420] }
  0x27   :  { %745 = vst [vmem:[#allocation1] ss:$2 sm:$0xff] %v2924_v2  ;;  %v758_v47 = vld.sshfl [vmem:[#allocation1 + $0x30] sm:$0xff pattern:$0x75316420] }
  0x28   :  { %938 = vst [vmem:[#allocation1 + $0x30] ss:$2 sm:$0xff] %v923_v48 }
  0x2a   :  { %403 = vrot.lane.b32.xlu1 %v391_v23, %s2851_s22  ;;  %v755_v34 = vld.sshfl [vmem:[#allocation1 + $0x18] sm:$0xff pattern:$0x75316420]  ;;  %v754_v35 = vld.sshfl [vmem:[#allocation1 + $0x10] sm:$0xff pattern:$0x75316420] }
  0x2b   :  { %395 = vrot.lane.b32.xlu0 %v387_v24, %s2851_s22  ;;  %580 = vrot.lane.b32.xlu2 %v573_v32, %s2852_s25  ;;  %934 = vst [vmem:[#allocation1 + $0x10] ss:$2 sm:$0xff] %v2919_v1  ;;  %v1860_v23 = vrot.slane %v1857_v12, 4  ;;  %v3200_v12 = vld [vmem:[%s3650_s2] sm:$0xff] }
  0x2c   :  { %v756_v42 = vld.sshfl [vmem:[#allocation1 + $0x20] sm:$0xff pattern:$0x75316420]  ;;  %v757_v44 = vld.sshfl [vmem:[#allocation1 + $0x28] sm:$0xff pattern:$0x75316420] }
  0x2d   :  { %936 = vst [vmem:[#allocation1 + $0x20] ss:$2 sm:$0xff] %v2936_v4 }
  0x2e   :  { %v753_v36 = vld.sshfl [vmem:[#allocation1 + $0x8] sm:$0xff pattern:$0x75316420]  ;;  %v752_v37 = vld.sshfl [vmem:[#allocation1] sm:$0xff pattern:$0x75316420] }
  0x2f   :  { %932 = vst [vmem:[#allocation1] ss:$2 sm:$0xff] %v2924_v2  ;;  %v945_v51 = vld.sshfl [vmem:[#allocation1 + $0x30] sm:$0xff pattern:$0x75316420] }
  0x30   :  { %1125 = vst [vmem:[#allocation1 + $0x30] ss:$2 sm:$0xff] %v1110_v52 }
  0x32   :  { %405 = vrot.lane.b32.xlu1 %v392_v33, %s2851_s22  ;;  %v941_v40 = vld.sshfl [vmem:[#allocation1 + $0x10] sm:$0xff pattern:$0x75316420]  ;;  %v942_v41 = vld.sshfl [vmem:[#allocation1 + $0x18] sm:$0xff pattern:$0x75316420] }
  0x33   :  { %582 = vrot.lane.b32.xlu0 %v574_v31, %s2852_s25  ;;  %560 = vrot.lane.b32.xlu2 %v558_v39, %s2853_s28  ;;  %1121 = vst [vmem:[#allocation1 + $0x10] ss:$2 sm:$0xff] %v2919_v1  ;;  %v1111_v33 = vld [vmem:[%s3655_s7] sm:$0xf] }
  0x34   :  { %v944_v46 = vld.sshfl [vmem:[#allocation1 + $0x28] sm:$0xff pattern:$0x75316420]  ;;  %v943_v49 = vld.sshfl [vmem:[#allocation1 + $0x20] sm:$0xff pattern:$0x75316420] }
  0x35   :  { %1123 = vst [vmem:[#allocation1 + $0x20] ss:$2 sm:$0xff] %v2936_v4 }
  0x36   :  { %v940_v43 = vld.sshfl [vmem:[#allocation1 + $0x8] sm:$0xff pattern:$0x75316420]  ;;  %v939_v45 = vld.sshfl [vmem:[#allocation1] sm:$0xff pattern:$0x75316420] }
  0x37   :  { %1119 = vst [vmem:[#allocation1] ss:$2 sm:$0xff] %v2924_v2  ;;  %v3049_v20 = vld.sshfl [vmem:[#allocation1 + $0x30] sm:$0xff pattern:$0x75316420] }
  0x38   :  { %1312 = vst [vmem:[#allocation1 + $0x30] ss:$2 sm:$0xff] %v1297_v21 }
  0x3a   :  { %586 = vrot.lane.b32.xlu1 %v576_v26, %s2852_s25  ;;  %v1128_v63 = vld.sshfl [vmem:[#allocation1 + $0x10] sm:$0xff pattern:$0x75316420]  ;;  %v1129_v7 = vld.sshfl [vmem:[#allocation1 + $0x18] sm:$0xff pattern:$0x75316420] }
  0x3b   :  { %584 = vrot.lane.b32.xlu0 %v575_v27, %s2852_s25  ;;  %588 = vrot.lane.b32.xlu2 %v577_v29, %s2852_s25  ;;  %1308 = vst [vmem:[#allocation1 + $0x10] ss:$2 sm:$0xff] %v2919_v1 }
  0x3c   :  { %v3030_v5 = vld.sshfl [vmem:[#allocation1 + $0x20] sm:$0xff pattern:$0x75316420]  ;;  %v3036_v10 = vld.sshfl [vmem:[#allocation1 + $0x28] sm:$0xff pattern:$0x75316420] }
  0x3d   :  { %1310 = vst [vmem:[#allocation1 + $0x20] ss:$2 sm:$0xff] %v2936_v4 }
  0x3e   :  { %v1126_v53 = vld.sshfl [vmem:[#allocation1] sm:$0xff pattern:$0x75316420]  ;;  %v3014_v54 = vld.sshfl [vmem:[#allocation1 + $0x8] sm:$0xff pattern:$0x75316420] }
  0x3f   :  { %1306 = vst [vmem:[#allocation1] ss:$2 sm:$0xff] %v2924_v2 }
  0x42   :  { %765 = vrot.lane.b32.xlu1 %v755_v34, %s2854_s29 }
  0x43   :  { %590 = vrot.lane.b32.xlu0 %v578_v28, %s2852_s25  ;;  %592 = vrot.lane.b32.xlu2 %v579_v38, %s2852_s25  ;;  %v3066_v28 = vld.sshfl [vmem:[#allocation1 + $0x30] sm:$0xff pattern:$0x75316420] }
  0x44   :  { %1499 = vst [vmem:[#allocation1 + $0x30] ss:$2 sm:$0xff] %v1484_v30  ;;  %v1317_v34 = vld.sshfl [vmem:[#allocation1 + $0x20] sm:$0xff pattern:$0x75316420] }
  0x46   :  { %v1313_v26 = vld.sshfl [vmem:[#allocation1] sm:$0xff pattern:$0x75316420]  ;;  %v1314_v27 = vld.sshfl [vmem:[#allocation1 + $0x8] sm:$0xff pattern:$0x75316420] }
  0x47   :  { %1493 = vst [vmem:[#allocation1] ss:$2 sm:$0xff] %v2924_v2 }
  0x4a   :  { %761 = vrot.lane.b32.xlu1 %v753_v36, %s2854_s29  ;;  %v1315_v36 = vld.sshfl [vmem:[#allocation1 + $0x10] sm:$0xff pattern:$0x75316420] }
  0x4b   :  { %763 = vrot.lane.b32.xlu0 %v754_v35, %s2854_s29  ;;  %743 = vrot.lane.b32.xlu2 %v741_v50, %s2855_s12  ;;  %v3087_v35 = vld.sshfl [vmem:[#allocation1 + $0x18] sm:$0xff pattern:$0x75316420]  ;;  %s2862_s12 = smov 96  }
  0x4c   :  { %1495 = vst [vmem:[#allocation1 + $0x10] ss:$2 sm:$0xff] %v2919_v1 }
  0x4e   :  { %v1500_v62 = vld.sshfl [vmem:[#allocation1] sm:$0xff pattern:$0x75316420] }
  0x52   :  { %948 = vrot.lane.b32.xlu1 %v940_v43, %s2856_s15 }
  0x53   :  { %759 = vrot.lane.b32.xlu0 %v752_v37, %s2854_s29  ;;  %767 = vrot.lane.b32.xlu2 %v756_v42, %s2854_s29  ;;  %v1318_v37 = vld.sshfl [vmem:[#allocation1 + $0x28] sm:$0xff pattern:$0x75316420]  ;;  %v1502_v42 = vld.sshfl [vmem:[#allocation1 + $0x10] sm:$0xff pattern:$0x75316420] }
  0x54   :  { %1497 = vst [vmem:[#allocation1 + $0x20] ss:$2 sm:$0xff] %v2936_v4  ;;  %v3109_v43 = vld.sshfl [vmem:[#allocation1 + $0x18] sm:$0xff pattern:$0x75316420] }
  0x55   :  { %1676 = vst [vmem:[#allocation1 + $0x10] ss:$2 sm:$0xff] %v2919_v1 }
  0x5a   :  { %950 = vrot.lane.b32.xlu1 %v941_v40, %s2856_s15 }
  0x5b   :  { %946 = vrot.lane.b32.xlu0 %v939_v45, %s2856_s15  ;;  %769 = vrot.lane.b32.xlu2 %v757_v44, %s2854_s29  ;;  %v3112_v44 = vld.sshfl [vmem:[#allocation1 + $0x20] sm:$0xff pattern:$0x75316420]  ;;  %v3117_v45 = vld.sshfl [vmem:[#allocation1 + $0x28] sm:$0xff pattern:$0x75316420] }
  0x5c   :  { %1678 = vst [vmem:[#allocation1 + $0x20] ss:$2 sm:$0xff] %v2936_v4  ;;  %v1684_v9 = vld.sshfl [vmem:[#allocation1 + $0x18] sm:$0xff pattern:$0x75316420] }
  0x62   :  { %956 = vrot.lane.b32.xlu1 %v944_v46, %s2856_s15 }
  0x63   :  { %926 = vrot.lane.b32.xlu0 %v924_v57, %s2856_s15  ;;  %771 = vrot.lane.b32.xlu2 %v758_v47, %s2854_s29 }
  0x64   :  { %v69_v60 = vpop.permute.xlu2 %68 }
  0x6a   :  { %1864 = vrot.lane.b32.xlu1 %v1861_v61, %s2857_s1  ;;  %v1501_v61 = vld.sshfl [vmem:[#allocation1 + $0x8] sm:$0xff pattern:$0x75316420] }
  0x6b   :  { %954 = vrot.lane.b32.xlu0 %v943_v49, %s2856_s15  ;;  %952 = vrot.lane.b32.xlu2 %v942_v41, %s2856_s15  ;;  %v1298_v41 = vld [vmem:[%s3655_s7] sm:$0xf]  ;;  %1674 = vst [vmem:[#allocation1] ss:$2 sm:$0xff] %v2924_v2 }
  0x6c   :  { %v3034_v8 = vpop.permute.xlu2 %70 }
  0x6d   :  { %v80_v11 = vsel %vm76_vm1, %v69_v60, %v3034_v8 }
  0x6e   :  { %2628 = vmatpush.msk.msra.mxu3 %vm86_vm0, %v80_v11 }
  0x70   :  { %2636 = vmatpush.msk.msrb.mxu3 %vm86_vm0, %v2965_v18  ;;  %v1856_v18 = vperm.slane %v32_v55, 4 }
  0x72   :  { %1137 = vrot.lane.b32.xlu1 %v1128_v63, %s2858_s20  ;;  %v1863_v25 = vsel %vm86_vm0, %v1856_v18, %v1860_v23  ;;  %v1682_v11 = vld.sshfl [vmem:[#allocation1 + $0x8] sm:$0xff pattern:$0x75316420] }
  0x73   :  { %958 = vrot.lane.b32.xlu0 %v945_v51, %s2856_s15  ;;  %1866 = vrot.lane.b32.xlu2 %v1862_v19, %s2857_s1  ;;  %v1685_v19 = vld.sshfl [vmem:[#allocation1 + $0x20] sm:$0xff pattern:$0x75316420] }
  0x74   :  { %v3054_v22 = vpop.permute.xlu1 %42 }
  0x75   :  { %v3056_v24 = vpop.permute.xlu2 %397  ;;  %2629 = vmatmul.msk.f32.vlgmr.msra.gmra.mxu3 %vm83_vm2, %v3054_v22 }
  0x76   :  { %2644 = vmatpush.msk.msra.mxu3 %vm86_vm0, %v2960_v16 }
  0x7a   :  { %1133 = vrot.lane.b32.xlu1 %v1126_v53, %s2858_s20 }
  0x7b   :  { %1868 = vrot.lane.b32.xlu0 %v1863_v25, %s2857_s1  ;;  %1139 = vrot.lane.b32.xlu2 %v1129_v7, %s2858_s20 }
  0x7c   :  { %v67_v29 = vpop.permute.xlu1 %66 }
  0x7d   :  { %v63_v16 = vpop.permute.xlu0 %62  ;;  %v79_v31 = vsel %vm76_vm1, %v67_v29, %v69_v60  ;;  %v3073_v32 = vpop.permute.xlu2 %393  ;;  %2637 = vmatmul.msk.f32.vlgmr.msrb.gmra.mxu3 %vm83_vm2, %v2914_v0  ;;  %v1485_v60 = vld [vmem:[%s3655_s7] sm:$0xf] }
  0x7e   :  { %2626 = vmatpush.msk.msra.mxu2 %vm86_vm0, %v79_v31 }
  0x7f   :  { %2627 = vmatmul.msk.f32.vlgmr.msra.gmra.mxu2 %vm83_vm2, %v3054_v22 }
  0x80   :  { %2634 = vmatpush.msk.msrb.mxu2 %vm86_vm0, %v2963_v17 }
  0x82   :  { %2642 = vmatpush.msk.msra.mxu2 %vm86_vm0, %v2958_v15  ;;  %1320 = vrot.lane.b32.xlu1 %v1313_v26, %s2859_s0 }
  0x83   :  { %1113 = vrot.lane.b32.xlu0 %v1111_v33, %s2860_s27  ;;  %1135 = vrot.lane.b32.xlu2 %v3014_v54, %s2858_s20 }
  0x84   :  { %v75_v17 = vpop.permute.xlu1 %74 }
  0x85   :  { %v65_v38 = vpop.permute.xlu0 %64  ;;  %v3094_v39 = vpop.permute.xlu2 %580  ;;  %2645 = vmatmul.msk.f32.vlgmr.msra.gmra.mxu3 %vm83_vm2, %v2914_v0 }
  0x86   :  { %v77_v15 = vsel %vm76_vm1, %v63_v16, %v65_v38  ;;  %v78_v40 = vsel %vm76_vm1, %v65_v38, %v67_v29 }
  0x87   :  { %2622 = vmatpush.msk.msra.mxu1 %vm86_vm0, %v77_v15  ;;  %2635 = vmatmul.msk.f32.vlgmr.msrb.gmra.mxu2 %vm83_vm2, %v2914_v0 }
  0x88   :  { %2623 = vmatmul.msk.f32.vlgmr.msra.gmra.mxu1 %vm83_vm2, %v3054_v22 }
  0x89   :  { %2624 = vmatpush.msk.msrb.mxu1 %vm86_vm0, %v78_v40 }
  0x8a   :  { %1300 = vrot.lane.b32.xlu1 %v1298_v41, %s2861_s9 }
  0x8b   :  { %1141 = vrot.lane.b32.xlu0 %v3030_v5, %s2858_s20  ;;  %1322 = vrot.lane.b32.xlu2 %v1314_v27, %s2859_s0  ;;  %v1506_v27 = vld.sshfl [vmem:[#allocation1 + $0x30] sm:$0xff pattern:$0x75316420] }
  0x8c   :  { %v3119_v46 = vpop.permute.xlu1 %373  ;;  %1680 = vst [vmem:[#allocation1 + $0x30] ss:$2 sm:$0xff] %v2931_v3 }
  0x8d   :  { %v73_v47 = vpop.permute.xlu0 %72  ;;  %v3122_v48 = vpop.permute.xlu2 %560 }
  0x8e   :  { %v82_v49 = vsel %vm76_vm1, %v73_v47, %v75_v17  ;;  %v81_v50 = vsel %vm76_vm1, %v3034_v8, %v73_v47  ;;  %v1683_v8 = vld.sshfl [vmem:[#allocation1 + $0x10] sm:$0xff pattern:$0x75316420] }
  0x8f   :  { %2630 = vmatpush.msk.msra.mxu0 %vm86_vm0, %v81_v50  ;;  %2632 = vmatpush.msk.msra.mxu1 %vm86_vm0, %v82_v49  ;;  %v2785_v25 = vpack.i.bf16 %v1685_v19, %v1683_v8 }
  0x90   :  { %2625 = vmatmul.msk.f32.vlgmr.msrb.gmra.mxu1 %vm83_vm2, %v3054_v22  ;;  %2631 = vmatmul.msk.f32.vlgmr.msra.gmra.mxu0 %vm83_vm2, %v3054_v22 }
  0x91   :  { %2643 = vmatmul.msk.f32.vlgmr.msra.gmra.mxu2 %vm83_vm2, %v2914_v0  ;;  %2638 = vmatpush.msk.msrb.mxu0 %vm86_vm0, %v2952_v13 }
  0x92   :  { %1328 = vrot.lane.b32.xlu1 %v1317_v34, %s2859_s0  ;;  %2640 = vmatpush.msk.msrb.mxu1 %vm86_vm0, %v2954_v14  ;;  %v1686_v34 = vld.sshfl [vmem:[#allocation1 + $0x28] sm:$0xff pattern:$0x75316420] }
  0x93   :  { %1143 = vrot.lane.b32.xlu0 %v3036_v10, %s2858_s20  ;;  %1324 = vrot.lane.b32.xlu2 %v1315_v36, %s2859_s0  ;;  %v1681_v10 = vld.sshfl [vmem:[#allocation1] sm:$0xff pattern:$0x75316420] }
  0x94   :  { %v402_v51 = vpop.permute.xlu1 %401  ;;  %1716 = vst [vmem:[#allocation1] ss:$4 sm:$0xff] %v3200_v12  ;;  %v2780_v26 = vpack.i.bf16 %v1682_v11, %v1681_v10 }
  0x95   :  { %v400_v52 = vpop.permute.xlu0 %399  ;;  %v3143_v53 = vpop.permute.xlu2 %588 }
  0x96   :  { %v410_v54 = vsel %vm407_vm3, %v3056_v24, %v400_v52  ;;  %v411_v13 = vsel %vm407_vm3, %v400_v52, %v402_v51 }
  0x97   :  { %2650 = vmatpush.msk.msrb.mxu2 %vm86_vm0, %v410_v54  ;;  %2652 = vmatpush.msk.msrb.mxu3 %vm86_vm0, %v411_v13 }
  0x98   :  { %2633 = vmatmul.msk.f32.vlgmr.msra.gmra.mxu1 %vm83_vm2, %v3054_v22  ;;  %2639 = vmatmul.msk.f32.vlgmr.msrb.gmra.mxu0 %vm83_vm2, %v2914_v0 }
  0x99   :  { %2651 = vmatmul.msk.f32.vlgmr.msrb.gmra.mxu2 %vm83_vm2, %v3119_v46  ;;  %2653 = vmatmul.msk.f32.vlgmr.msrb.gmra.mxu3 %vm83_vm2, %v3119_v46 }
  0x9a   :  { %1332 = vrot.lane.b32.xlu1 %v3066_v28, %s2859_s0 }
  0x9b   :  { %1145 = vrot.lane.b32.xlu0 %v3049_v20, %s2858_s20  ;;  %1330 = vrot.lane.b32.xlu2 %v1318_v37, %s2859_s0 }
  0x9c   :  { %v404_v14 = vpop.permute.xlu1 %403 }
  0x9d   :  { %v396_v55 = vpop.permute.xlu0 %395  ;;  %v3163_v56 = vpop.permute.xlu2 %592  ;;  %v412_v57 = vsel %vm407_vm3, %v402_v51, %v404_v14 }
  0x9e   :  { %v408_v58 = vsel %vm407_vm3, %v3073_v32, %v396_v55  ;;  %v409_v59 = vsel %vm407_vm3, %v396_v55, %v3056_v24 }
  0x9f   :  { %2646 = vmatpush.msk.msra.mxu0 %vm86_vm0, %v408_v58  ;;  %2648 = vmatpush.msk.msra.mxu1 %vm86_vm0, %v409_v59  ;;  %v3284_v59 = vld.sshfl [vmem:[#allocation1] sm:$0xff pattern:$0x73625140] }
  0xa0   :  { %2641 = vmatmul.msk.f32.vlgmr.msrb.gmra.mxu1 %vm83_vm2, %v2914_v0  ;;  %2647 = vmatmul.msk.f32.vlgmr.msra.gmra.mxu0 %vm83_vm2, %v3119_v46 }
  0xa1   :  { %2654 = vmatpush.msk.msrb.mxu0 %vm86_vm0, %v412_v57 }
  0xa2   :  { %1487 = vrot.lane.b32.xlu1 %v1485_v60, %s2862_s12  ;;  %v3286_v60 = vld.sshfl [vmem:[#allocation1 + $0x8] sm:$0xff pattern:$0x73625140] }
  0xa3   :  { %1326 = vrot.lane.b32.xlu0 %v3087_v35, %s2859_s0  ;;  %1511 = vrot.lane.b32.xlu2 %v1502_v42, %s2863_s13 }
  0xa4   :  { %v406_v63 = vpop.permute.xlu1 %405 }
  0xa5   :  { %v413_v0 = vsel %vm407_vm3, %v404_v14, %v406_v63  ;;  %v583_v5 = vpop.permute.xlu0 %582  ;;  %v3185_v6 = vpop.permute.xlu2 %743 }
  0xa6   :  { %v595_v7 = vsel %vm594_vm4, %v3094_v39, %v583_v5  ;;  %2656 = vmatpush.msk.msrb.mxu1 %vm86_vm0, %v413_v0  ;;  %v2790_v39 = vpack.i.bf16 %v1684_v9, %v1686_v34 }
  0xa7   :  { %2658 = vmatpush.msk.msra.mxu2 %vm86_vm0, %v595_v7 }
  0xa8   :  { %2649 = vmatmul.msk.f32.vlgmr.msra.gmra.mxu1 %vm83_vm2, %v3119_v46  ;;  %2655 = vmatmul.msk.f32.vlgmr.msrb.gmra.mxu0 %vm83_vm2, %v3119_v46 }
  0xa9   :  { %2659 = vmatmul.msk.f32.vlgmr.msra.gmra.mxu2 %vm83_vm2, %v3122_v48 }
  0xaa   :  { %1515 = vrot.lane.b32.xlu1 %v3112_v44, %s2863_s13 }
  0xab   :  { %1513 = vrot.lane.b32.xlu0 %v3109_v43, %s2863_s13  ;;  %1507 = vrot.lane.b32.xlu2 %v1500_v62, %s2863_s13 }
  0xac   :  { %v587_v20 = vpop.permute.xlu1 %586 }
  0xad   :  { %v598_v21 = vsel %vm594_vm4, %v587_v20, %v3143_v53  ;;  %v585_v22 = vpop.permute.xlu0 %584  ;;  %v768_v18 = vpop.permute.xlu2 %767 }
  0xae   :  { %v596_v23 = vsel %vm594_vm4, %v583_v5, %v585_v22  ;;  %v597_v24 = vsel %vm594_vm4, %v585_v22, %v587_v20  ;;  %2664 = vmatpush.msk.msra.mxu1 %vm86_vm0, %v598_v21  ;;  %v3296_v5 = vld.sshfl [vmem:[#allocation1 + $0x10] sm:$0xff pattern:$0x73625140] }
  0xaf   :  { %2660 = vmatpush.msk.msra.mxu3 %vm86_vm0, %v596_v23  ;;  %2662 = vmatpush.msk.msra.mxu0 %vm86_vm0, %v597_v24 }
  0xb0   :  { %2657 = vmatmul.msk.f32.vlgmr.msrb.gmra.mxu1 %vm83_vm2, %v3119_v46  ;;  %2661 = vmatmul.msk.f32.vlgmr.msra.gmra.mxu3 %vm83_vm2, %v3122_v48  ;;  %v3266_v46 = vld [vmem:[%s3650_s2 + $0x8] sm:$0xf] }
  0xb1   :  { %2663 = vmatmul.msk.f32.vlgmr.msra.gmra.mxu0 %vm83_vm2, %v3122_v48 }
  0xb2   :  { %2786 = vrot.lane.b32.xlu1 %v2785_v25, %s2854_s29 }
  0xb3   :  { %1509 = vrot.lane.b32.xlu0 %v1501_v61, %s2863_s13  ;;  %2781 = vrot.lane.b32.xlu2 %v2780_v26, %s2854_s29 }
  0xb4   :  { %v766_v28 = vpop.permute.xlu1 %765 }
  0xb5   :  { %v591_v29 = vpop.permute.xlu0 %590  ;;  %v770_v30 = vpop.permute.xlu2 %769  ;;  %v777_v32 = vsel %vm773_vm5, %v766_v28, %v768_v18 }
  0xb6   :  { %v599_v16 = vsel %vm594_vm4, %v3143_v53, %v591_v29  ;;  %v600_v31 = vsel %vm594_vm4, %v591_v29, %v3163_v56  ;;  %v778_v41 = vsel %vm773_vm5, %v768_v18, %v770_v30 }
  0xb7   :  { %2666 = vmatpush.msk.msrb.mxu2 %vm86_vm0, %v599_v16  ;;  %2668 = vmatpush.msk.msrb.mxu3 %vm86_vm0, %v600_v31 }
  0xb8   :  { %2665 = vmatmul.msk.f32.vlgmr.msra.gmra.mxu1 %vm83_vm2, %v3122_v48  ;;  %2667 = vmatmul.msk.f32.vlgmr.msrb.gmra.mxu2 %vm83_vm2, %v3122_v48 }
  0xb9   :  { %2669 = vmatmul.msk.f32.vlgmr.msrb.gmra.mxu3 %vm83_vm2, %v3122_v48 }
  0xba   :  { %2676 = vmatpush.msk.msra.mxu3 %vm86_vm0, %v777_v32 }
  0xbb   :  { %1517 = vrot.lane.b32.xlu0 %v3117_v45, %s2863_s13  ;;  %1519 = vrot.lane.b32.xlu2 %v1506_v27, %s2863_s13  ;;  %v1687_v45 = vld.sshfl [vmem:[#allocation1 + $0x30] sm:$0xff pattern:$0x75316420] }
  0xbc   :  { %v762_v33 = vpop.permute.xlu1 %761  ;;  %1718 = vst [vmem:[#allocation1 + $0x20] ss:$4 sm:$0xff] %v3266_v46 }
  0xbd   :  { %v764_v35 = vpop.permute.xlu0 %763  ;;  %v772_v36 = vpop.permute.xlu2 %771 }
  0xbe   :  { %v776_v37 = vsel %vm773_vm5, %v764_v35, %v766_v28  ;;  %v775_v17 = vsel %vm773_vm5, %v762_v33, %v764_v35  ;;  %v779_v38 = vsel %vm773_vm5, %v770_v30, %v772_v36 }
  0xbf   :  { %2672 = vmatpush.msk.msrb.mxu1 %vm86_vm0, %v775_v17  ;;  %2674 = vmatpush.msk.msra.mxu2 %vm86_vm0, %v776_v37 }
  0xc0   :  { %2673 = vmatmul.msk.f32.vlgmr.msrb.gmra.mxu1 %vm83_vm2, %v3185_v6  ;;  %2675 = vmatmul.msk.f32.vlgmr.msra.gmra.mxu2 %vm83_vm2, %v3185_v6 }
  0xc1   :  { %2677 = vmatmul.msk.f32.vlgmr.msra.gmra.mxu3 %vm83_vm2, %v3185_v6  ;;  %2680 = vmatpush.msk.msra.mxu1 %vm86_vm0, %v779_v38 }
  0xc3   :  { %2791 = vrot.lane.b32.xlu0 %v2790_v39, %s2854_s29  ;;  %v3319_v34 = vld.sshfl [vmem:[#allocation1 + $0x28] sm:$0xff pattern:$0x73625140] }
  0xc4   :  { %v949_v15 = vpop.permute.xlu1 %948 }
  0xc5   :  { %v760_v40 = vpop.permute.xlu0 %759  ;;  %v953_v43 = vpop.permute.xlu2 %952 }
  0xc6   :  { %v774_v42 = vsel %vm773_vm5, %v760_v40, %v762_v33  ;;  %v3317_v33 = vld.sshfl [vmem:[#allocation1 + $0x20] sm:$0xff pattern:$0x73625140] }
  0xc7   :  { %2670 = vmatpush.msk.msrb.mxu0 %vm86_vm0, %v774_v42 }
  0xc8   :  { %2671 = vmatmul.msk.f32.vlgmr.msrb.gmra.mxu0 %vm83_vm2, %v3185_v6  ;;  %2681 = vmatmul.msk.f32.vlgmr.msra.gmra.mxu1 %vm83_vm2, %v3185_v6 }
  0xc9   :  { %2678 = vmatpush.msk.msra.mxu0 %vm86_vm0, %v778_v41 }
  0xcc   :  { %v951_v44 = vpop.permute.xlu1 %950 }
  0xcd   :  { %v962_v47 = vsel %vm960_vm6, %v949_v15, %v951_v44  ;;  %v947_v48 = vpop.permute.xlu0 %946  ;;  %v963_v49 = vsel %vm960_vm6, %v951_v44, %v953_v43  ;;  %v1867_v51 = vpop.permute.xlu2 %1866 }
  0xce   :  { %v961_v50 = vsel %vm960_vm6, %v947_v48, %v949_v15  ;;  %2684 = vmatpush.msk.msrb.mxu3 %vm86_vm0, %v962_v47  ;;  %2686 = vmatpush.msk.msrb.mxu0 %vm86_vm0, %v963_v49  ;;  %v1871_v13 = vrot.slane %v1867_v51, 4 }
  0xcf   :  { %2682 = vmatpush.msk.msrb.mxu2 %vm86_vm0, %v961_v50 }
  0xd0   :  { %2679 = vmatmul.msk.f32.vlgmr.msra.gmra.mxu0 %vm83_vm2, %v3185_v6  ;;  %v3298_v6 = vld.sshfl [vmem:[#allocation1 + $0x18] sm:$0xff pattern:$0x73625140] }
  0xd4   :  { %v957_v52 = vpop.permute.xlu1 %956 }
  0xd5   :  { %v927_v53 = vpop.permute.xlu0 %926  ;;  %v3280_v54 = vpop.permute.xlu2 %1139 }
  0xd6   :  { %2683 = vmatmul.msk.f32.vlgmr.msrb.gmra.mxu2 %vm83_vm2, %v927_v53  ;;  %2685 = vmatmul.msk.f32.vlgmr.msrb.gmra.mxu3 %vm83_vm2, %v927_v53 }
  0xd8   :  { %2687 = vmatmul.msk.f32.vlgmr.msrb.gmra.mxu0 %vm83_vm2, %v927_v53 }
  0xdc   :  { %v1865_v14 = vpop.permute.xlu1 %1864 }
  0xdd   :  { %v955_v55 = vpop.permute.xlu0 %954  ;;  %v1870_v56 = vrot.slane %v1865_v14, 4  ;;  %v1136_v9 = vpop.permute.xlu2 %1135 }
  0xde   :  { %v964_v57 = vsel %vm960_vm6, %v953_v43, %v955_v55  ;;  %v965_v58 = vsel %vm960_vm6, %v955_v55, %v957_v52 }
  0xdf   :  { %v1874_v61 = vsel %vm1873_vm7, %v1870_v56, %v1865_v14  ;;  %v1875_v62 = vsel %vm86_vm0, %v1870_v56, %v1871_v13  ;;  %2688 = vmatpush.msk.msrb.mxu1 %vm86_vm0, %v964_v57  ;;  %2690 = vmatpush.msk.msra.mxu2 %vm86_vm0, %v965_v58 }
  0xe0   :  { %v1876_v63 = vsel %vm1873_vm7, %v1875_v62, %v1867_v51  ;;  %v1883_v0 = vmul.f32 %v1874_v61, %v2924_v2  ;;  %2689 = vmatmul.msk.f32.vlgmr.msrb.gmra.mxu1 %vm83_vm2, %v927_v53  ;;  %2691 = vmatmul.msk.f32.vlgmr.msra.gmra.mxu2 %vm83_vm2, %v927_v53 }
  0xe1   :  { %v1884_v7 = vmul.f32 %v1876_v63, %v2919_v1 }
  0xe2   :  { %1891 = vst [vmem:[#allocation1] ss:$2 sm:$0xff] %v1883_v0 }
  0xe3   :  { %1893 = vst [vmem:[#allocation1 + $0x10] ss:$2 sm:$0xff] %v1884_v7 }
  0xe4   :  { %v1138_v8 = vpop.permute.xlu1 %1137 }
  0xe5   :  { %v959_v10 = vpop.permute.xlu0 %958  ;;  %v1150_v11 = vsel %vm1147_vm8, %v1138_v8, %v3280_v54  ;;  %v1149_v19 = vsel %vm1147_vm8, %v1136_v9, %v1138_v8  ;;  %v1323_v30 = vpop.permute.xlu2 %1322 }
  0xe6   :  { %v966_v20 = vsel %vm960_vm6, %v957_v52, %v959_v10  ;;  %2696 = vmatpush.msk.msra.mxu1 %vm86_vm0, %v1149_v19  ;;  %2698 = vmatpush.msk.msrb.mxu2 %vm86_vm0, %v1150_v11 }
  0xe7   :  { %2692 = vmatpush.msk.msra.mxu3 %vm86_vm0, %v966_v20 }
  0xe8   :  { %2693 = vmatmul.msk.f32.vlgmr.msra.gmra.mxu3 %vm83_vm2, %v927_v53 }
  0xe9   :  { %v1898_v21 = vld.sshfl [vmem:[#allocation1] sm:$0xff pattern:$0x75316420]  ;;  %v1899_v22 = vld.sshfl [vmem:[#allocation1 + $0x8] sm:$0xff pattern:$0x75316420] }
  0xea   :  { %v1900_v18 = vld.sshfl [vmem:[#allocation1 + $0x10] sm:$0xff pattern:$0x75316420]  ;;  %v1901_v23 = vld.sshfl [vmem:[#allocation1 + $0x18] sm:$0xff pattern:$0x75316420] }
  0xeb   :  { %v2795_v24 = vpack.i.bf16 %v1900_v18, %v1687_v45  ;;  %v2800_v25 = vpack.i.bf16 %v1898_v21, %v1901_v23  ;;  %1931 = vst [vmem:[#allocation1] ss:$4 sm:$0xff] %v3200_v12 }
  0xec   :  { %v1134_v26 = vpop.permute.xlu1 %1133 }
  0xed   :  { %v1869_v27 = vpop.permute.xlu0 %1868  ;;  %v1148_v28 = vsel %vm1147_vm8, %v1134_v26, %v1136_v9  ;;  %2796 = vrot.lane.b32.xlu1 %v2795_v24, %s2854_s29  ;;  %2801 = vrot.lane.b32.xlu2 %v2800_v25, %s2854_s29  ;;  %v1325_v41 = vpop.permute.xlu2 %1324 }
  0xee   :  { %v1872_v29 = vrot.slane %v1869_v27, 4  ;;  %2694 = vmatpush.msk.msra.mxu0 %vm86_vm0, %v1148_v28  ;;  %v1336_v50 = vsel %vm1334_vm9, %v1323_v30, %v1325_v41 }
  0xf0   :  { %v1877_v16 = vsel %vm86_vm0, %v1871_v13, %v1872_v29  ;;  %v1886_v31 = vmul.f32 %v1872_v29, %v2931_v3 }
  0xf1   :  { %v1878_v32 = vsel %vm1873_vm7, %v1877_v16, %v1869_v27 }
  0xf2   :  { %v1885_v35 = vmul.f32 %v1878_v32, %v2936_v4  ;;  %1897 = vst [vmem:[#allocation1 + $0x30] ss:$2 sm:$0xff] %v1886_v31  ;;  %v3322_v36 = vld.sshfl [vmem:[#allocation1 + $0x10] sm:$0xff pattern:$0x73625140] }
  0xf3   :  { %v3324_v37 = vld.sshfl [vmem:[#allocation1 + $0x18] sm:$0xff pattern:$0x73625140]  ;;  %v3326_v17 = vld.sshfl [vmem:[#allocation1] sm:$0xff pattern:$0x73625140] }
  0xf4   :  { %v1321_v38 = vpop.permute.xlu1 %1320  ;;  %1895 = vst [vmem:[#allocation1 + $0x20] ss:$2 sm:$0xff] %v1885_v35  ;;  %v3328_v39 = vld.sshfl [vmem:[#allocation1 + $0x8] sm:$0xff pattern:$0x73625140] }
  0xf5   :  { %v1114_v15 = vpop.permute.xlu0 %1113  ;;  %v1335_v40 = vsel %vm1334_vm9, %v1321_v38, %v1323_v30  ;;  %2364 = vst [vmem:[#allocation1] ss:$4 sm:$0xff] %v3200_v12  ;;  %v1331_v53 = vpop.permute.xlu2 %1330 }
  0xf6   :  { %2695 = vmatmul.msk.f32.vlgmr.msra.gmra.mxu0 %vm83_vm2, %v1114_v15  ;;  %2697 = vmatmul.msk.f32.vlgmr.msra.gmra.mxu1 %vm83_vm2, %v1114_v15 }
  0xf7   :  { %2699 = vmatmul.msk.f32.vlgmr.msrb.gmra.mxu2 %vm83_vm2, %v1114_v15 }
  0xf8   :  { %2706 = vmatpush.msk.msra.mxu2 %vm86_vm0, %v1335_v40  ;;  %v176_v51 = vpop.f32.mrf.mxu3 }
  0xf9   :  { %v1904_v42 = vld.sshfl [vmem:[#allocation1 + $0x30] sm:$0xff pattern:$0x75316420] }
  0xfb   :  { %v1903_v43 = vld.sshfl [vmem:[#allocation1 + $0x28] sm:$0xff pattern:$0x75316420]  ;;  %v1902_v44 = vld.sshfl [vmem:[#allocation1 + $0x20] sm:$0xff pattern:$0x75316420] }
  0xfc   :  { %v1301_v45 = vpop.permute.xlu1 %1300  ;;  %v2810_v47 = vpack.i.bf16 %v1904_v42, %v1903_v43  ;;  %v2805_v48 = vpack.i.bf16 %v1902_v44, %v1899_v22  ;;  %1933 = vst [vmem:[#allocation1 + $0x20] ss:$4 sm:$0xff] %v3266_v46 }
  0xfd   :  { %v1142_v49 = vpop.permute.xlu0 %1141  ;;  %v1512_v0 = vpop.permute.xlu2 %1511 }
  0xfe   :  { %v1151_v12 = vsel %vm1147_vm8, %v3280_v54, %v1142_v49  ;;  %2811 = vrot.lane.b32.xlu1 %v2810_v47, %s2854_s29  ;;  %2806 = vrot.lane.b32.xlu0 %v2805_v48, %s2854_s29 }
  0xff   :  { %2707 = vmatmul.msk.f32.vlgmr.msra.gmra.mxu2 %vm83_vm2, %v1301_v45  ;;  %2700 = vmatpush.msk.msrb.mxu3 %vm86_vm0, %v1151_v12 }
 0x100   :  { %2701 = vmatmul.msk.f32.vlgmr.msrb.gmra.mxu3 %vm83_vm2, %v1114_v15  ;;  %v284_v61 = vpop.f32.mrf.mxu3 }
 0x101   :  { %2708 = vmatpush.msk.msra.mxu3 %vm86_vm0, %v1336_v50 }
 0x102   :  { %v156_v52 = vpop.f32.mrf.mxu2 }
 0x103   :  { %v3346_v13 = vld.sshfl [vmem:[#allocation1 + $0x20] sm:$0xff pattern:$0x73625140]  ;;  %v3348_v54 = vld.sshfl [vmem:[#allocation1 + $0x28] sm:$0xff pattern:$0x73625140] }
 0x104   :  { %v1329_v14 = vpop.permute.xlu1 %1328  ;;  %2366 = vst [vmem:[#allocation1 + $0x20] ss:$4 sm:$0xff] %v3266_v46 }
 0x105   :  { %v116_v55 = vpop.f32.mrf.mxu1  ;;  %v1144_v56 = vpop.permute.xlu0 %1143  ;;  %v1339_v57 = vsel %vm1334_vm9, %v1329_v14, %v1331_v53 }
 0x106   :  { %v1152_v58 = vsel %vm1147_vm8, %v1142_v49, %v1144_v56  ;;  %2714 = vmatpush.msk.msrb.mxu2 %vm86_vm0, %v1339_v57  ;;  %v1508_v28 = vpop.permute.xlu2 %1507  ;;  %v2103_v57 = vld [vmem:[%s3652_s4 + $0x78] sm:$0xff] }
 0x107   :  { %2702 = vmatpush.msk.msrb.mxu0 %vm86_vm0, %v1152_v58  ;;  %2715 = vmatmul.msk.f32.vlgmr.msrb.gmra.mxu2 %vm83_vm2, %v1301_v45 }
 0x108   :  { %2703 = vmatmul.msk.f32.vlgmr.msrb.gmra.mxu0 %vm83_vm2, %v1114_v15  ;;  %2709 = vmatmul.msk.f32.vlgmr.msra.gmra.mxu3 %vm83_vm2, %v1301_v45  ;;  %v364_v20 = vpop.f32.mrf.mxu3 }
 0x10a   :  { %v264_v62 = vpop.f32.mrf.mxu2 }
 0x10b   :  { %v3358_v63 = vadd.f32 %v264_v62, %v116_v55 }
 0x10c   :  { %v1333_v46 = vpop.permute.xlu1 %1332 }
 0x10d   :  { %v136_v7 = vpop.f32.mrf.mxu1  ;;  %v196_v8 = vpop.f32.mrf.mxu0  ;;  %v1340_v9 = vsel %vm1334_vm9, %v1331_v53, %v1333_v46 }
 0x10e   :  { %v3361_v10 = vadd.f32 %v284_v61, %v136_v7  ;;  %v1146_v11 = vpop.permute.xlu0 %1145  ;;  %2716 = vmatpush.msk.msrb.mxu3 %vm86_vm0, %v1340_v9  ;;  %v2782_v40 = vpop.permute.xlu2 %2781 }
 0x10f   :  { %v1153_v19 = vsel %vm1147_vm8, %v1144_v56, %v1146_v11  ;;  %v2783_v42 = vunpack.i.l.bf16 %v2782_v40  ;;  %v2864_v56 = vmov 0   ;;  %v2102_v11 = vld [vmem:[%s3652_s4 + $0x70] sm:$0xff] }
 0x110   :  { %2704 = vmatpush.msk.msrb.mxu1 %vm86_vm0, %v1153_v19  ;;  %2717 = vmatmul.msk.f32.vlgmr.msrb.gmra.mxu3 %vm83_vm2, %v1301_v45 }
 0x111   :  { %2705 = vmatmul.msk.f32.vlgmr.msrb.gmra.mxu1 %vm83_vm2, %v1114_v15  ;;  %2815 = vset.pattern.permute.xlu2 %v2864_v56 }
 0x112   :  { %2816 = vset.pattern.permute.xlu0 %v2864_v56  ;;  %2181 = vperm.xlu2 %2815, %v2103_v57  }
 0x113   :  { %2817 = vset.pattern.permute.xlu1 %v2864_v56  ;;  %2176 = vperm.xlu0 %2816, %v2102_v11  }
 0x114   :  { %v344_v21 = vpop.f32.mrf.mxu2  ;;  %v1488_v22 = vpop.permute.xlu1 %1487 }
 0x115   :  { %v3368_v18 = vadd.f32 %v344_v21, %v196_v8  ;;  %v216_v23 = vpop.f32.mrf.mxu1  ;;  %v304_v24 = vpop.f32.mrf.mxu0  ;;  %v2100_v21 = vld [vmem:[%s3652_s4 + $0x60] sm:$0xff] }
 0x116   :  { %v3370_v25 = vadd.f32 %v364_v20, %v216_v23  ;;  %v3372_v26 = vadd.f32 %v304_v24, %v156_v52  ;;  %v1327_v27 = vpop.permute.xlu0 %1326  ;;  %v2101_v20 = vld [vmem:[%s3652_s4 + $0x68] sm:$0xff] }
 0x117   :  { %v1337_v29 = vsel %vm1334_vm9, %v1325_v41, %v1327_v27  ;;  %v1338_v30 = vsel %vm1334_vm9, %v1327_v27, %v1329_v14  ;;  %v2784_v41 = vunpack.i.h.bf16 %v2782_v40  ;;  %2171 = vperm.xlu1 %2817, %v2101_v20   ;;  %v2097_v27 = vld [vmem:[%s3652_s4 + $0x48] sm:$0xff]  ;;  %v2315_v20 = vld [vmem:[%s3654_s6] sm:$0xff] }
 0x118   :  { %2710 = vmatpush.msk.msra.mxu0 %vm86_vm0, %v1337_v29  ;;  %2712 = vmatpush.msk.msra.mxu1 %vm86_vm0, %v1338_v30  ;;  %v2098_v29 = vld [vmem:[%s3652_s4 + $0x50] sm:$0xff] }
 0x119   :  { %2711 = vmatmul.msk.f32.vlgmr.msra.gmra.mxu0 %vm83_vm2, %v1301_v45  ;;  %2713 = vmatmul.msk.f32.vlgmr.msra.gmra.mxu1 %vm83_vm2, %v1301_v45  ;;  %v1702_v49 = vsel %vm773_vm5, %v2783_v42, %v2784_v41 }
 0x11a   :  { %2166 = vperm.xlu2 %2815, %v2100_v21  }
 0x11b   :  { %2151 = vperm.xlu0 %2816, %v2097_v27  }
 0x11c   :  { %v1516_v35 = vpop.permute.xlu1 %1515 }
 0x11d   :  { %v324_v16 = vpop.f32.mrf.mxu1 }
 0x11e   :  { %v3380_v31 = vadd.f32 %v324_v16, %v176_v51  ;;  %v1514_v32 = vpop.permute.xlu0 %1513 }
 0x11f   :  { %v1524_v38 = vsel %vm1521_vm10, %v1512_v0, %v1514_v32  ;;  %v1525_v15 = vsel %vm1521_vm10, %v1514_v32, %v1516_v35 }
 0x120   :  { %2722 = vmatpush.msk.msra.mxu2 %vm86_vm0, %v1524_v38  ;;  %2724 = vmatpush.msk.msra.mxu3 %vm86_vm0, %v1525_v15 }
 0x121   :  { %2723 = vmatmul.msk.f32.vlgmr.msra.gmra.mxu2 %vm83_vm2, %v1488_v22  ;;  %2725 = vmatmul.msk.f32.vlgmr.msra.gmra.mxu3 %vm83_vm2, %v1488_v22 }
 0x122   :  { %1746 = vmatpush.xpose.msrb.mxu2 %v3284_v59  ;;  %1766 = vmatpush.xpose.msrb.mxu3 %v3286_v60  ;;  %v1520_v60 = vpop.permute.xlu2 %1519 }
 0x123   :  { %2156 = vperm.xlu2 %2815, %v2098_v29  }
 0x124   :  { %v2787_v44 = vpop.permute.xlu1 %2786 }
 0x125   :  { %v2788_v48 = vunpack.i.l.bf16 %v2787_v44 }
 0x126   :  { %1826 = vmatpush.xpose.msra.mxu2 %v3317_v33  ;;  %1846 = vmatpush.xpose.msra.mxu3 %v3319_v34  ;;  %v1510_v43 = vpop.permute.xlu0 %1509 }
 0x127   :  { %v1522_v45 = vsel %vm1521_vm10, %v1508_v28, %v1510_v43  ;;  %v1523_v47 = vsel %vm1521_vm10, %v1510_v43, %v1512_v0  ;;  %v1703_v59 = vsel %vm773_vm5, %v2784_v41, %v2788_v48  ;;  %v2099_v28 = vld [vmem:[%s3652_s4 + $0x58] sm:$0xff] }
 0x128   :  { %2718 = vmatpush.msk.msrb.mxu0 %vm86_vm0, %v1522_v45  ;;  %2720 = vmatpush.msk.msrb.mxu1 %vm86_vm0, %v1523_v47  ;;  %v2094_v47 = vld [vmem:[%s3652_s4 + $0x30] sm:$0xff] }
 0x129   :  { %2719 = vmatmul.msk.f32.vlgmr.msrb.gmra.mxu0 %vm83_vm2, %v1488_v22  ;;  %2721 = vmatmul.msk.f32.vlgmr.msrb.gmra.mxu1 %vm83_vm2, %v1488_v22 }
 0x12a   :  { %1747 = vmatmul.f32.vlgmr.msrb.gmra.mxu2 %v1702_v49  ;;  %1767 = vmatmul.f32.vlgmr.msrb.gmra.mxu3 %v1703_v59  ;;  %v2096_v59 = vld [vmem:[%s3652_s4 + $0x40] sm:$0xff] }
 0x12b   :  { %2001 = vmatpush.xpose.msrb.mxu2 %v3322_v36  ;;  %2021 = vmatpush.xpose.msrb.mxu3 %v3324_v37  ;;  %v2789_v36 = vunpack.i.h.bf16 %v2787_v44 }
 0x12c   :  { %2161 = vperm.xlu1 %2817, %v2099_v28   ;;  %2136 = vperm.xlu0 %2816, %v2094_v47  }
 0x12e   :  { %v1518_v33 = vpop.permute.xlu0 %1517 }
 0x12f   :  { %v1526_v34 = vsel %vm1521_vm10, %v1516_v35, %v1518_v33  ;;  %v1527_v12 = vsel %vm1521_vm10, %v1518_v33, %v1520_v60  ;;  %v2095_v60 = vld [vmem:[%s3652_s4 + $0x38] sm:$0xff] }
 0x130   :  { %2726 = vmatpush.msk.msra.mxu0 %vm86_vm0, %v1526_v34  ;;  %2728 = vmatpush.msk.msra.mxu1 %vm86_vm0, %v1527_v12  ;;  %v2091_v12 = vld [vmem:[%s3652_s4 + $0x18] sm:$0xff] }
 0x131   :  { %2727 = vmatmul.msk.f32.vlgmr.msra.gmra.mxu0 %vm83_vm2, %v1488_v22  ;;  %2729 = vmatmul.msk.f32.vlgmr.msra.gmra.mxu1 %vm83_vm2, %v1488_v22  ;;  %vm2373_vm2 = vcmask 15360  }
 0x132   :  { %1786 = vmatpush.xpose.msrb.mxu0 %v3296_v5  ;;  %1806 = vmatpush.xpose.msrb.mxu1 %v3298_v6  ;;  %v3417_v5 = vpop.f32.mrf.mxu1  ;;  %v3419_v6 = vpop.f32.mrf.mxu3 }
 0x133   :  { %2141 = vperm.xlu2 %2815, %v2095_v60  }
 0x134   :  { %2146 = vperm.xlu1 %2817, %v2096_v59   ;;  %2121 = vperm.xlu0 %2816, %v2091_v12  }
 0x136   :  { %1961 = vmatpush.xpose.msra.mxu0 %v3326_v17  ;;  %1981 = vmatpush.xpose.msra.mxu1 %v3328_v39  ;;  %v2792_v37 = vpop.permute.xlu0 %2791  ;;  %v3421_v17 = vpop.f32.mrf.mxu0 }
 0x137   :  { %v2794_v50 = vunpack.i.h.bf16 %v2792_v37  ;;  %v2793_v51 = vunpack.i.l.bf16 %v2792_v37  ;;  %v3423_v39 = vpop.f32.mrf.mxu2 }
 0x139   :  { %v1704_v52 = vsel %vm773_vm5, %v2788_v48, %v2794_v50  ;;  %v1705_v53 = vsel %vm773_vm5, %v2794_v50, %v2789_v36  ;;  %v1706_v14 = vsel %vm773_vm5, %v2789_v36, %v2793_v51 }
 0x13a   :  { %1787 = vmatmul.f32.vlgmr.msrb.gmra.mxu0 %v1704_v52  ;;  %1807 = vmatmul.f32.vlgmr.msrb.gmra.mxu1 %v1705_v53  ;;  %v3425_v55 = vpop.f32.mrf.mxu3  ;;  %v2093_v52 = vld [vmem:[%s3652_s4 + $0x28] sm:$0xff]  ;;  %v2092_v53 = vld [vmem:[%s3652_s4 + $0x20] sm:$0xff] }
 0x13b   :  { %2041 = vmatpush.xpose.msrb.mxu0 %v3346_v13  ;;  %2061 = vmatpush.xpose.msrb.mxu1 %v3348_v54  ;;  %v3430_v13 = vpop.f32.mrf.mxu1 }
 0x13c   :  { %1827 = vmatmul.f32.vlgmr.msra.gmra.mxu2 %v1706_v14  ;;  %2131 = vperm.xlu1 %2817, %v2093_v52  }
 0x13d   :  { %2126 = vperm.xlu2 %2815, %v2092_v53  }
 0x13e   :  { %v3432_v61 = vpop.f32.mrf.mxu0 }
 0x13f   :  { %v3434_v62 = vpop.f32.mrf.mxu2 }
 0x142   :  { %v3441_v19 = vpop.f32.mrf.mxu3 }
 0x143   :  { %v3449_v22 = vpop.f32.mrf.mxu1 }
 0x146   :  { %v3453_v24 = vpop.f32.mrf.mxu0 }
 0x147   :  { %v2802_v54 = vpop.permute.xlu2 %2801  ;;  %v3451_v23 = vpop.f32.mrf.mxu2 }
 0x148   :  { %v2803_v46 = vunpack.i.l.bf16 %v2802_v54  ;;  %v2804_v35 = vunpack.i.h.bf16 %v2802_v54  ;;  %v2088_v54 = vld [vmem:[%s3652_s4] sm:$0xff] }
 0x149   :  { %2106 = vperm.xlu0 %2816, %v2088_v54  }
 0x14a   :  { %v3464_v30 = vpop.f32.mrf.mxu3 }
 0x14b   :  { %v3466_v32 = vpop.f32.mrf.mxu1 }
 0x14e   :  { %v3468_v41 = vpop.f32.mrf.mxu0 }
 0x14f   :  { %v851_v40 = vpop.f32.mrf.mxu2 }
 0x153   :  { %v3487_v50 = vpop.f32.mrf.mxu1 }
 0x159   :  { %v1018_v33 = vpop.f32.mrf.mxu3  ;;  %v998_v34 = vpop.f32.mrf.mxu2 }
 0x15d   :  { %v1058_v57 = vpop.f32.mrf.mxu1 }
 0x15f   :  { %v2797_v58 = vpop.permute.xlu1 %2796 }
 0x160   :  { %v2799_v0 = vunpack.i.h.bf16 %v2797_v58  ;;  %v2798_v7 = vunpack.i.l.bf16 %v2797_v58 }
 0x162   :  { %v1707_v8 = vsel %vm773_vm5, %v2793_v51, %v2798_v7  ;;  %v1921_v9 = vsel %vm773_vm5, %v2799_v0, %v2803_v46  ;;  %v3489_v51 = vpop.f32.mrf.mxu0 }
 0x163   :  { %1847 = vmatmul.f32.vlgmr.msra.gmra.mxu3 %v1707_v8  ;;  %2002 = vmatmul.f32.vlgmr.msrb.gmra.mxu2 %v1921_v9  ;;  %v1078_v56 = vpop.f32.mrf.mxu2 }
 0x16a   :  { %v1038_v58 = vpop.f32.mrf.mxu0 }
 0x16b   :  { %v3497_v14 = vpop.f32.mrf.mxu3 }
 0x170   :  { %v2807_v16 = vpop.permute.xlu0 %2806  ;;  %v2812_v45 = vpop.permute.xlu1 %2811 }
 0x171   :  { %v2809_v38 = vunpack.i.h.bf16 %v2807_v16  ;;  %v2808_v15 = vunpack.i.l.bf16 %v2807_v16  ;;  %v2814_v48 = vunpack.i.h.bf16 %v2812_v45  ;;  %v2813_v49 = vunpack.i.l.bf16 %v2812_v45 }
 0x172   :  { %v550_v16 = vadd.f32 %v3423_v39, %v3372_v26 }
 0x173   :  { %v1919_v42 = vsel %vm773_vm5, %v2804_v35, %v2808_v15  ;;  %v1920_v43 = vsel %vm773_vm5, %v2808_v15, %v2799_v0  ;;  %v1922_v44 = vsel %vm773_vm5, %v2803_v46, %v2809_v38  ;;  %v1923_v36 = vsel %vm773_vm5, %v2809_v38, %v2813_v49  ;;  %v2090_v46 = vld [vmem:[%s3652_s4 + $0x10] sm:$0xff]  ;;  %v2089_v0 = vld [vmem:[%s3652_s4 + $0x8] sm:$0xff]  ;;  %v1205_v9 = vpop.f32.mrf.mxu1  ;;  %v1185_v11 = vpop.f32.mrf.mxu0 }
 0x174   :  { %1962 = vmatmul.f32.vlgmr.msra.gmra.mxu0 %v1919_v42  ;;  %1982 = vmatmul.f32.vlgmr.msra.gmra.mxu1 %v1920_v43  ;;  %v1924_v37 = vsel %vm773_vm5, %v2813_v49, %v2814_v48  ;;  %v551_v35 = vadd.f32 %v3419_v6, %v3380_v31  ;;  %v548_v38 = vadd.f32 %v3421_v17, %v3358_v63 }
 0x175   :  { %2022 = vmatmul.f32.vlgmr.msrb.gmra.mxu3 %v1922_v44  ;;  %2116 = vperm.xlu1 %2817, %v2090_v46   ;;  %v549_v15 = vadd.f32 %v3417_v5, %v3361_v10  ;;  %v737_v42 = vadd.f32 %v3453_v24, %v550_v16 }
 0x176   :  { %2111 = vperm.xlu2 %2815, %v2089_v0   ;;  %v738_v43 = vadd.f32 %v3449_v22, %v551_v35  ;;  %v735_v47 = vadd.f32 %v3434_v62, %v548_v38  ;;  %v552_v62 = vadd.f32 %v3432_v61, %v3368_v18 }
 0x177   :  { %v736_v48 = vadd.f32 %v3425_v55, %v549_v15  ;;  %v916_v26 = vadd.f32 %v851_v40, %v737_v42  ;;  %v553_v55 = vadd.f32 %v3430_v13, %v3370_v25 }
 0x178   :  { %v917_v39 = vadd.f32 %v3464_v30, %v738_v43  ;;  %v914_v17 = vadd.f32 %v3468_v41, %v735_v47 }
 0x179   :  { %v915_v63 = vadd.f32 %v3466_v32, %v736_v48  ;;  %v1103_v10 = vadd.f32 %v1038_v58, %v916_v26  ;;  %v739_v32 = vadd.f32 %v3451_v23, %v552_v62  ;;  %v740_v41 = vadd.f32 %v3441_v19, %v553_v55 }
 0x17a   :  { %v1225_v8 = vpop.f32.mrf.mxu2  ;;  %v1104_v5 = vadd.f32 %v1058_v57, %v917_v39  ;;  %v1101_v24 = vadd.f32 %v998_v34, %v914_v17 }
 0x17b   :  { %v1102_v49 = vadd.f32 %v1018_v33, %v915_v63  ;;  %v1290_v22 = vadd.f32 %v1225_v8, %v1103_v10  ;;  %v918_v57 = vadd.f32 %v3489_v51, %v739_v32  ;;  %v919_v25 = vadd.f32 %v3487_v50, %v740_v41 }
 0x17c   :  { %2042 = vmatmul.f32.vlgmr.msrb.gmra.mxu0 %v1923_v36  ;;  %2062 = vmatmul.f32.vlgmr.msrb.gmra.mxu1 %v1924_v37  ;;  %v1288_v40 = vadd.f32 %v1185_v11, %v1101_v24 }
 0x17d   :  { %2318 = vperm.xlu1 %2817, %v2315_v20   ;;  %v1289_v30 = vadd.f32 %v1205_v9, %v1102_v49  ;;  %v1105_v46 = vadd.f32 %v1078_v56, %v918_v57  ;;  %v1106_v23 = vadd.f32 %v3497_v14, %v919_v25  ;;  %v2369_v57 = vld.sshfl [vmem:[#allocation1 + $0x10] sm:$0xff pattern:$0x73625140]  ;;  %v2084_v25 = vld [vmem:[%s3651_s3 + $0x60] sm:$0xff] }
 0x182   :  { %v1372_v27 = vpop.f32.mrf.mxu2 }
 0x183   :  { %v1245_v7 = vpop.f32.mrf.mxu3  ;;  %v1475_v34 = vadd.f32 %v1372_v27, %v1288_v40 }
 0x184   :  { %v1291_v59 = vadd.f32 %v1245_v7, %v1104_v5 }
 0x185   :  { %v1265_v29 = vpop.f32.mrf.mxu0 }
 0x186   :  { %v1292_v8 = vadd.f32 %v1265_v29, %v1105_v46  ;;  %v2074_v46 = vld [vmem:[%s3651_s3 + $0x10] sm:$0xff] }
 0x18a   :  { %v1452_v44 = vpop.f32.mrf.mxu2 }
 0x18b   :  { %v1392_v21 = vpop.f32.mrf.mxu3  ;;  %v1479_v51 = vadd.f32 %v1452_v44, %v1292_v8  ;;  %v2081_v8 = vld [vmem:[%s3651_s3 + $0x48] sm:$0xff] }
 0x18c   :  { %v1476_v33 = vadd.f32 %v1392_v21, %v1289_v30 }
 0x18e   :  { %v1285_v28 = vpop.f32.mrf.mxu1 }
 0x18f   :  { %v1293_v9 = vadd.f32 %v1285_v28, %v1106_v23  ;;  %v2079_v23 = vld [vmem:[%s3651_s3 + $0x38] sm:$0xff] }
 0x193   :  { %v1472_v45 = vpop.f32.mrf.mxu3 }
 0x194   :  { %v1480_v27 = vadd.f32 %v1472_v45, %v1293_v9  ;;  %v2082_v9 = vld [vmem:[%s3651_s3 + $0x50] sm:$0xff] }
 0x196   :  { %v1412_v31 = vpop.f32.mrf.mxu0  ;;  %v1432_v6 = vpop.f32.mrf.mxu1 }
 0x197   :  { %v1477_v60 = vadd.f32 %v1412_v31, %v1290_v22  ;;  %v1478_v12 = vadd.f32 %v1432_v6, %v1291_v59 }
 0x1a4   :  { %v1599_v36 = vpop.f32.mrf.mxu2  ;;  %v1619_v37 = vpop.f32.mrf.mxu3 }
 0x1a5   :  { %v1664_v52 = vadd.f32 %v1599_v36, %v1477_v60  ;;  %v1665_v53 = vadd.f32 %v1619_v37, %v1478_v12  ;;  %v2076_v36 = vld [vmem:[%s3651_s3 + $0x20] sm:$0xff]  ;;  %v2083_v37 = vld [vmem:[%s3651_s3 + $0x58] sm:$0xff] }
 0x1a6   :  { %v1559_v18 = vpop.f32.mrf.mxu0  ;;  %v1579_v61 = vpop.f32.mrf.mxu1 }
 0x1a7   :  { %v1671_v13 = vmax.f32 %v1665_v53, 0.0  ;;  %v1662_v54 = vadd.f32 %v1559_v18, %v1475_v34  ;;  %v1663_v58 = vadd.f32 %v1579_v61, %v1476_v33  ;;  %v1670_v0 = vmax.f32 %v1664_v52, 0.0  ;;  %v2072_v34 = vld [vmem:[%s3651_s3] sm:$0xff]  ;;  %v2075_v33 = vld [vmem:[%s3651_s3 + $0x18] sm:$0xff]  ;;  %v2077_v61 = vld [vmem:[%s3651_s3 + $0x28] sm:$0xff] }
 0x1a8   :  { %v2367_v52 = vld.sshfl [vmem:[#allocation1] sm:$0xff pattern:$0x73625140]  ;;  %v2368_v53 = vld.sshfl [vmem:[#allocation1 + $0x8] sm:$0xff pattern:$0x73625140] }
 0x1a9   :  { %v2517_v19 = vrot.slane %v1671_v13, 4  ;;  %v1669_v7 = vmax.f32 %v1663_v58, 0.0  ;;  %v1668_v11 = vmax.f32 %v1662_v54, 0.0  ;;  %v2370_v18 = vld.sshfl [vmem:[#allocation1 + $0x18] sm:$0xff pattern:$0x73625140] }
 0x1aa   :  { %v2073_v13 = vld [vmem:[%s3651_s3 + $0x8] sm:$0xff]  ;;  %v2078_v54 = vld [vmem:[%s3651_s3 + $0x30] sm:$0xff] }
 0x1ab   :  { %v2516_v20 = vrot.slane %v1669_v7, 4  ;;  %v2520_v21 = vsel %vm86_vm0, %v1670_v0, %v2517_v19  ;;  %v2085_v58 = vld [vmem:[%s3651_s3 + $0x68] sm:$0xff]  ;;  %v2086_v0 = vld [vmem:[%s3651_s3 + $0x70] sm:$0xff]  ;;  %v2080_v19 = vld [vmem:[%s3651_s3 + $0x40] sm:$0xff] }
 0x1ac   :  { %2524 = vrot.lane.b32.xlu0 %v2520_v21, %s2857_s1  ;;  %v2087_v7 = vld [vmem:[%s3651_s3 + $0x78] sm:$0xff] }
 0x1ad   :  { %v2519_v50 = vsel %vm86_vm0, %v1668_v11, %v2516_v20  ;;  %v1748_v42 = vpop.f32.mrf.mxu2  ;;  %v1768_v43 = vpop.f32.mrf.mxu3 }
 0x1ae   :  { %v1639_v16 = vpop.f32.mrf.mxu0  ;;  %v1659_v35 = vpop.f32.mrf.mxu1  ;;  %2522 = vrot.lane.b32.xlu2 %v2519_v50, %s2857_s1  ;;  %v1769_v48 = vadd.f32 %v1768_v43, %v1748_v42 }
 0x1af   :  { %v1666_v14 = vadd.f32 %v1639_v16, %v1479_v51  ;;  %v1667_v56 = vadd.f32 %v1659_v35, %v1480_v27  ;;  %v2182_v27 = vpop.permute.xlu2 %2181  ;;  %v2172_v35 = vpop.permute.xlu1 %2171 }
 0x1b1   :  { %v1673_v38 = vmax.f32 %v1667_v56, 0.0  ;;  %v1672_v15 = vmax.f32 %v1666_v14, 0.0 }
 0x1b3   :  { %v2518_v29 = vrot.slane %v1673_v38, 4 }
 0x1b5   :  { %v2521_v28 = vsel %vm86_vm0, %v1672_v15, %v2518_v29  ;;  %v2177_v15 = vpop.permute.xlu0 %2176 }
 0x1b6   :  { %2526 = vrot.lane.b32.xlu1 %v2521_v28, %s2857_s1 }
 0x1b7   :  { %v1788_v47 = vpop.f32.mrf.mxu0  ;;  %v1808_v44 = vpop.f32.mrf.mxu1 }
 0x1b8   :  { %v1789_v6 = vadd.f32 %v1788_v47, %v1769_v48  ;;  %v2167_v14 = vpop.permute.xlu2 %2166  ;;  %v2162_v29 = vpop.permute.xlu1 %2161 }
 0x1ba   :  { %v1809_v10 = vadd.f32 %v1808_v44, %v1789_v6 }
 0x1bf   :  { %v1828_v45 = vpop.f32.mrf.mxu2 }
 0x1c0   :  { %v1829_v59 = vadd.f32 %v1828_v45, %v1809_v10  ;;  %v2157_v44 = vpop.permute.xlu2 %2156 }
 0x1e6   :  { %v1848_v26 = vpop.f32.mrf.mxu3  ;;  %v2003_v17 = vpop.f32.mrf.mxu2 }
 0x1e7   :  { %v1849_v40 = vadd.f32 %v1848_v26, %v1829_v59  ;;  %v2152_v26 = vpop.permute.xlu0 %2151 }
 0x1ef   :  { %v2137_v59 = vpop.permute.xlu0 %2136 }
 0x1f1   :  { %v1963_v39 = vpop.f32.mrf.mxu0  ;;  %v1983_v31 = vpop.f32.mrf.mxu1 }
 0x1f2   :  { %v1984_v63 = vadd.f32 %v1983_v31, %v1963_v39 }
 0x1f4   :  { %v2004_v5 = vadd.f32 %v2003_v17, %v1984_v63 }
 0x1f8   :  { %v2023_v24 = vpop.f32.mrf.mxu3 }
 0x1f9   :  { %v2024_v49 = vadd.f32 %v2023_v24, %v2004_v5  ;;  %v2043_v22 = vpop.f32.mrf.mxu0  ;;  %v2063_v55 = vpop.f32.mrf.mxu1 }
 0x1fa   :  { %v2147_v24 = vpop.permute.xlu1 %2146 }
 0x1fb   :  { %v2044_v62 = vadd.f32 %v2043_v22, %v2024_v49  ;;  %v2142_v22 = vpop.permute.xlu2 %2141 }
 0x1fd   :  { %v2064_v30 = vadd.f32 %v2063_v55, %v2044_v62 }
 0x1ff   :  { %v2066_v60 = vsub.f32 %v1849_v40, %v2064_v30 }
 0x201   :  { %v2068_v12 = vrot.slane %v2066_v60, 4 }
 0x203   :  { %v2070_v32 = vsel %vm86_vm0, %v1849_v40, %v2068_v12 }
 0x204   :  { %v2071_v41 = vmul.f32 0.00390625, %v2070_v32  ;;  %v2132_v32 = vpop.permute.xlu1 %2131 }
 0x206   :  { %2248 = vmatpush.msra.mxu0 %v2071_v41  ;;  %2759 = vmatpush.msra.mxu1 %v2071_v41 }
 0x207   :  { %2760 = vmatpush.msra.mxu2 %v2071_v41  ;;  %2761 = vmatpush.msra.mxu3 %v2071_v41 }
 0x208   :  { %2734 = vmatmul.msk.f32.vlgmr.msra.gmra.mxu2 %vm2184_vm11, %v2076_v36  ;;  %2741 = vmatmul.msk.f32.vlgmr.msra.gmra.mxu3 %vm2184_vm11, %v2083_v37  ;;  %v2127_v37 = vpop.permute.xlu2 %2126 }
 0x209   :  { %2747 = vmatpush.msk.msrb.mxu0 %vm2377_vm12, %v2367_v52  ;;  %2749 = vmatpush.msk.msrb.mxu1 %vm2377_vm12, %v2368_v53  ;;  %v2122_v52 = vpop.permute.xlu0 %2121 }
 0x20a   :  { %2730 = vmatmul.msk.f32.vlgmr.msra.gmra.mxu0 %vm2184_vm11, %v2072_v34  ;;  %2733 = vmatmul.msk.f32.vlgmr.msra.gmra.mxu1 %vm2184_vm11, %v2075_v33 }
 0x20b   :  { %2751 = vmatpush.msk.msra.mxu0 %vm2377_vm12, %v2369_v57  ;;  %2753 = vmatpush.msk.msra.mxu1 %vm2377_vm12, %v2370_v18 }
 0x210   :  { %2735 = vmatmul.msk.f32.gmra.mxu2 %vm2184_vm11, %v2077_v61  ;;  %2742 = vmatmul.msk.f32.gmra.mxu3 %vm2184_vm11, %v2084_v25 }
 0x212   :  { %2731 = vmatmul.msk.f32.gmra.mxu0 %vm2184_vm11, %v2073_v13 }
 0x218   :  { %2736 = vmatmul.msk.f32.gmra.mxu2 %vm2184_vm11, %v2078_v54  ;;  %2743 = vmatmul.msk.f32.gmra.mxu3 %vm2184_vm11, %v2085_v58 }
 0x21a   :  { %2732 = vmatmul.msk.f32.gmra.mxu0 %vm2184_vm11, %v2074_v46  ;;  %v2117_v46 = vpop.permute.xlu1 %2116 }
 0x220   :  { %2737 = vmatmul.msk.f32.gmra.mxu2 %vm2184_vm11, %v2079_v23  ;;  %2744 = vmatmul.msk.f32.gmra.mxu3 %vm2184_vm11, %v2086_v0 }
 0x228   :  { %2738 = vmatmul.msk.f32.gmra.mxu2 %vm2184_vm11, %v2080_v19  ;;  %2745 = vmatmul.msk.f32.gmra.mxu3 %vm2184_vm11, %v2087_v7  ;;  %v2112_v19 = vpop.permute.xlu2 %2111 }
 0x230   :  { %2739 = vmatmul.msk.f32.gmra.mxu2 %vm2184_vm11, %v2081_v8 }
 0x238   :  { %2740 = vmatmul.msk.f32.gmra.mxu2 %vm2184_vm11, %v2082_v9  ;;  %v2107_v9 = vpop.permute.xlu0 %2106 }
 0x287   :  { %v2250_v17 = vpop.f32.mrf.mxu0  ;;  %v2259_v18 = vpop.f32.mrf.mxu1 }
 0x288   :  { %v2260_v58 = vadd.f32 %v2259_v18, %v2122_v52 }
 0x28a   :  { %v2301_v8 = vmax.f32 %v2260_v58, 0.0 }
 0x28b   :  { %v2262_v11 = vpop.f32.mrf.mxu2  ;;  %v2283_v20 = vpop.f32.mrf.mxu3 }
 0x28c   :  { %v2284_v6 = vadd.f32 %v2283_v20, %v2162_v29  ;;  %v2263_v61 = vadd.f32 %v2262_v11, %v2127_v37  ;;  %v2251_v20 = vadd.f32 %v2250_v17, %v2107_v9 }
 0x28e   :  { %v2309_v49 = vmax.f32 %v2284_v6, 0.0  ;;  %v2302_v23 = vmax.f32 %v2263_v61, 0.0  ;;  %v2298_v11 = vmax.f32 %v2251_v20, 0.0  ;;  %v2371_v6 = vld.sshfl [vmem:[#allocation1 + $0x20] sm:$0xff pattern:$0x73625140] }
 0x28f   :  { %v2253_v30 = vpop.f32.mrf.mxu0 }
 0x290   :  { %v2254_v7 = vadd.f32 %v2253_v30, %v2112_v19 }
 0x293   :  { %v2265_v21 = vpop.f32.mrf.mxu2  ;;  %v2286_v51 = vpop.f32.mrf.mxu3 }
 0x294   :  { %v2287_v39 = vadd.f32 %v2286_v51, %v2167_v14  ;;  %v2266_v53 = vadd.f32 %v2265_v21, %v2132_v32  ;;  %v2299_v51 = vmax.f32 %v2254_v7, 0.0 }
 0x296   :  { %v2310_v5 = vmax.f32 %v2287_v39, 0.0  ;;  %v2303_v54 = vmax.f32 %v2266_v53, 0.0  ;;  %v2525_v53 = vpop.permute.xlu0 %2524 }
 0x297   :  { %v2256_v13 = vpop.f32.mrf.mxu0 }
 0x298   :  { %v2257_v0 = vadd.f32 %v2256_v13, %v2117_v46 }
 0x29a   :  { %v2300_v21 = vmax.f32 %v2257_v0, 0.0 }
 0x29b   :  { %v2268_v50 = vpop.f32.mrf.mxu2  ;;  %v2289_v16 = vpop.f32.mrf.mxu3 }
 0x29c   :  { %v2290_v45 = vadd.f32 %v2289_v16, %v2172_v35  ;;  %v2269_v34 = vadd.f32 %v2268_v50, %v2137_v59  ;;  %v2319_v50 = vpop.permute.xlu1 %2318 }
 0x29e   :  { %v2311_v63 = vmax.f32 %v2290_v45, 0.0  ;;  %v2304_v25 = vmax.f32 %v2269_v34, 0.0 }
 0x2a3   :  { %v2271_v56 = vpop.f32.mrf.mxu2  ;;  %v2292_v38 = vpop.f32.mrf.mxu3 }
 0x2a4   :  { %v2293_v43 = vadd.f32 %v2292_v38, %v2177_v15  ;;  %v2272_v41 = vadd.f32 %v2271_v56, %v2142_v22  ;;  %v2527_v61 = vpop.permute.xlu1 %2526 }
 0x2a6   :  { %v2312_v31 = vmax.f32 %v2293_v43, 0.0  ;;  %v2305_v57 = vmax.f32 %v2272_v41, 0.0 }
 0x2ab   :  { %v2274_v28 = vpop.f32.mrf.mxu2  ;;  %v2295_v42 = vpop.f32.mrf.mxu3 }
 0x2ac   :  { %v2296_v47 = vadd.f32 %v2295_v42, %v2182_v27  ;;  %v2275_v60 = vadd.f32 %v2274_v28, %v2147_v24  ;;  %v2314_v27 = vld [vmem:[%s3653_s5] sm:$0xff]  ;;  %s2865_s5 = smov [#allocation2]  }
 0x2ae   :  { %v2313_v48 = vmax.f32 %v2296_v47, 0.0  ;;  %v2306_v33 = vmax.f32 %v2275_v60, 0.0 }
 0x2b0   :  { %2321 = vmatpush.msrb.mxu3 %v2313_v48 }
 0x2b2   :  { %2322 = vmatpush.msrb.mxu3 %v2312_v31 }
 0x2b3   :  { %v2277_v10 = vpop.f32.mrf.mxu2 }
 0x2b4   :  { %2323 = vmatpush.msrb.mxu3 %v2311_v63  ;;  %v2278_v55 = vadd.f32 %v2277_v10, %v2152_v26  ;;  %v2372_v63 = vld.sshfl [vmem:[#allocation1 + $0x28] sm:$0xff pattern:$0x73625140] }
 0x2b6   :  { %2324 = vmatpush.msrb.mxu3 %v2310_v5  ;;  %v2307_v36 = vmax.f32 %v2278_v55, 0.0 }
 0x2b8   :  { %2325 = vmatpush.msrb.mxu3 %v2309_v49 }
 0x2bb   :  { %v2280_v62 = vpop.f32.mrf.mxu2 }
 0x2bc   :  { %v2281_v40 = vadd.f32 %v2280_v62, %v2157_v44 }
 0x2be   :  { %v2308_v12 = vmax.f32 %v2281_v40, 0.0 }
 0x2c0   :  { %2326 = vmatpush.msrb.mxu3 %v2308_v12  ;;  %v2523_v12 = vpop.permute.xlu2 %2522 }
 0x2c1   :  { %v2528_v32 = vrot.slane %v2523_v12, 4 }
 0x2c2   :  { %2327 = vmatpush.msrb.mxu3 %v2307_v36 }
 0x2c3   :  { %v2531_v41 = vsel %vm1873_vm7, %v2528_v32, %v2523_v12 }
 0x2c4   :  { %2328 = vmatpush.msrb.mxu3 %v2306_v33  ;;  %v2540_v34 = vmul.f32 %v2531_v41, %v2924_v2 }
 0x2c6   :  { %2329 = vmatpush.msrb.mxu3 %v2305_v57  ;;  %v2529_v57 = vrot.slane %v2525_v53, 4 }
 0x2c8   :  { %2330 = vmatpush.msrb.mxu3 %v2304_v25  ;;  %v2532_v18 = vsel %vm86_vm0, %v2528_v32, %v2529_v57 }
 0x2c9   :  { %v2533_v25 = vsel %vm1873_vm7, %v2532_v18, %v2525_v53 }
 0x2ca   :  { %2331 = vmatpush.msrb.mxu3 %v2303_v54  ;;  %v2530_v54 = vrot.slane %v2527_v61, 4  ;;  %v2541_v46 = vmul.f32 %v2533_v25, %v2919_v1 }
 0x2cc   :  { %2332 = vmatpush.msrb.mxu3 %v2302_v23  ;;  %v2534_v0 = vsel %vm86_vm0, %v2529_v57, %v2530_v54  ;;  %v2543_v9 = vmul.f32 %v2530_v54, %v2931_v3 }
 0x2cd   :  { %v2535_v7 = vsel %vm1873_vm7, %v2534_v0, %v2527_v61 }
 0x2ce   :  { %2333 = vmatpush.msrb.mxu3 %v2301_v8 }
 0x2d0   :  { %2334 = vmatpush.msrb.mxu3 %v2300_v21  ;;  %v2542_v21 = vmul.f32 %v2535_v7, %v2936_v4 }
 0x2d2   :  { %2335 = vmatpush.msrb.mxu3 %v2299_v51 }
 0x2d4   :  { %2336 = vmatpush.msrb.mxu3 %v2298_v11 }
 0x2d5   :  { %2337 = vmatmul.f32.vlgmr.msrb.gmra.mxu3 %v2314_v27 }
 0x358   :  { %v2338_v16 = vpop.f32.mrf.mxu3 }
 0x359   :  { %v2339_v35 = vadd.f32 %v2338_v16, %v2319_v50 }
 0x35b   :  { %v2746_v14 = vmul.f32 -1.442695, %v2339_v35 }
 0x35d   :  { %2818 = vpow2.f32 %v2746_v14 }
 0x363   :  { %v2819_v56 = vpop.eup %2818 }
 0x364   :  { %v2344_v38 = vadd.f32 1.0, %v2819_v56 }
 0x366   :  { %2820 = vrcp.f32 %v2344_v38  ;;  %v2356_v42 = vand.u32 2147483648, %v2344_v38  ;;  %v2354_v47 = vand.u32 2147483647, %v2344_v38  ;;  %vm2350_vm14 = vweird.f32 %v2344_v38 }
 0x368   :  { %v2357_v45 = vor.u32 1.1754944e-38, %v2356_v42  ;;  %vm2355_vm1 = vcmp.eq.f32.partialorder %v2354_v47, 8.507059e+37 }
 0x36c   :  { %v2821_v15 = vpop.eup %2820 }
 0x36d   :  { %v2346_v29 = vmul.f32 %v2821_v15, %v2344_v38  ;;  %vm2351_vm13 = vweird.f32 %v2821_v15 }
 0x36e   :  { %vm2352_vm15 = vmor %vm2350_vm14, %vm2351_vm13 }
 0x36f   :  { %v2347_v28 = vsub.f32 1.0, %v2346_v29 }
 0x371   :  { %v2348_v43 = vmul.f32 %v2821_v15, %v2347_v28 }
 0x373   :  { %v2349_v44 = vadd.f32 %v2821_v15, %v2348_v43 }
 0x375   :  { %v2353_v48 = vsel %vm2352_vm15, %v2821_v15, %v2349_v44 }
 0x376   :  { %v2358_v26 = vsel %vm2355_vm1, %v2357_v45, %v2353_v48 }
 0x377   :  { %v2361_v39 = vrot.slane %v2358_v26, 4 }
 0x379   :  { %v2363_v31 = vmul.f32 %v2361_v39, %v2358_v26 }
 0x37b   :  { %2748 = vmatmul.msk.f32.vlgmr.msrb.gmra.mxu0 %vm2373_vm2, %v2363_v31  ;;  %2750 = vmatmul.msk.f32.vlgmr.msrb.gmra.mxu1 %vm2373_vm2, %v2363_v31 }
 0x37c   :  { %2755 = vmatpush.msk.msrb.mxu0 %vm2377_vm12, %v2371_v6  ;;  %2757 = vmatpush.msk.msrb.mxu1 %vm2377_vm12, %v2372_v63 }
 0x383   :  { %2752 = vmatmul.msk.f32.vlgmr.msra.gmra.mxu0 %vm2373_vm2, %v2363_v31  ;;  %2754 = vmatmul.msk.f32.vlgmr.msra.gmra.mxu1 %vm2373_vm2, %v2363_v31 }
 0x38b   :  { %2756 = vmatmul.msk.f32.vlgmr.msrb.gmra.mxu0 %vm2373_vm2, %v2363_v31  ;;  %2758 = vmatmul.msk.f32.vlgmr.msrb.gmra.mxu1 %vm2373_vm2, %v2363_v31 }
 0x3f8   :  { %v2407_v17 = vpop.f32.mrf.mxu0  ;;  %v2427_v10 = vpop.f32.mrf.mxu1 }
 0x3f9   :  { %v2550_v5 = vrot.slane %v2427_v10, 4 }
 0x3fb   :  { %v2553_v24 = vsel %vm86_vm0, %v2407_v17, %v2550_v5 }
 0x3fc   :  { %2556 = vrot.lane.b32.xlu2 %v2553_v24, %s2857_s1 }
 0x400   :  { %v2447_v49 = vpop.f32.mrf.mxu0  ;;  %v2467_v22 = vpop.f32.mrf.mxu1 }
 0x401   :  { %v2551_v59 = vrot.slane %v2467_v22, 4 }
 0x403   :  { %v2554_v62 = vsel %vm86_vm0, %v2447_v49, %v2551_v59 }
 0x404   :  { %2558 = vrot.lane.b32.xlu0 %v2554_v62, %s2857_s1 }
 0x408   :  { %v2507_v55 = vpop.f32.mrf.mxu1  ;;  %v2487_v30 = vpop.f32.mrf.mxu0 }
 0x409   :  { %v2552_v40 = vrot.slane %v2507_v55, 4 }
 0x40b   :  { %v2555_v60 = vsel %vm86_vm0, %v2487_v30, %v2552_v40 }
 0x40c   :  { %2560 = vrot.lane.b32.xlu1 %v2555_v60, %s2857_s1  ;;  %s2611_s1 = sshll.u32 %s2865_s5, 4  ;;  %s2612_s1 = int_to_ptr.vmem [resolvable:$true] %s2611_s1 }
 0x456   :  { %v2557_v36 = vpop.permute.xlu2 %2556 }
 0x457   :  { %v2562_v37 = vrot.slane %v2557_v36, 4 }
 0x459   :  { %v2565_v33 = vsel %vm1873_vm7, %v2562_v37, %v2557_v36 }
 0x45a   :  { %v2574_v52 = vmul.f32 %v2565_v33, %v2540_v34 }
 0x45c   :  { %2582 = vrot.lane.b32.xlu2 %v2574_v52, %s2854_s29 }
 0x476   :  { %v2559_v13 = vpop.permute.xlu0 %2558 }
 0x477   :  { %v2563_v58 = vrot.slane %v2559_v13, 4 }
 0x479   :  { %v2566_v23 = vsel %vm86_vm0, %v2562_v37, %v2563_v58 }
 0x47a   :  { %v2567_v2 = vsel %vm1873_vm7, %v2566_v23, %v2559_v13 }
 0x47b   :  { %v2575_v19 = vmul.f32 %v2567_v2, %v2541_v46 }
 0x47d   :  { %2584 = vrot.lane.b32.xlu0 %v2575_v19, %s2854_s29 }
 0x47e   :  { %v2561_v8 = vpop.permute.xlu1 %2560 }
 0x47f   :  { %v2564_v20 = vrot.slane %v2561_v8, 4 }
 0x481   :  { %v2568_v51 = vsel %vm86_vm0, %v2563_v58, %v2564_v20  ;;  %v2577_v1 = vmul.f32 %v2564_v20, %v2543_v9 }
 0x482   :  { %v2569_v11 = vsel %vm1873_vm7, %v2568_v51, %v2561_v8 }
 0x483   :  { %v2576_v27 = vmul.f32 %v2569_v11, %v2542_v21  ;;  %2588 = vrot.lane.b32.xlu2 %v2577_v1, %s2854_s29 }
 0x485   :  { %2586 = vrot.lane.b32.xlu1 %v2576_v27, %s2854_s29 }
 0x4b6   :  { %v2583_v50 = vpop.permute.xlu2 %2582 }
 0x4b7   :  { %v2590_v35 = vrot.slane %v2583_v50, 4 }
 0x4dd   :  { %v2589_v4 = vpop.permute.xlu2 %2588 }
 0x4de   :  { %v2593_v15 = vrot.slane %v2589_v4, 4 }
 0x4ef   :  { %v2585_v16 = vpop.permute.xlu0 %2584 }
 0x4f0   :  { %v2591_v14 = vrot.slane %v2585_v16, 4 }
 0x4f2   :  { %v2594_v56 = vsel %vm86_vm0, %v2590_v35, %v2591_v14 }
 0x4f3   :  { %v2595_v3 = vsel %vm773_vm5, %v2583_v50, %v2594_v56 }
 0x4f4   :  { %2603 = vst [vmem:[#allocation2] sm:$0xff] %v2595_v3 }
 0x4f7   :  { %v2587_v38 = vpop.permute.xlu1 %2586 }
 0x4f8   :  { %v2592_v29 = vrot.slane %v2587_v38, 4 }
 0x4fa   :  { %v2596_v28 = vsel %vm86_vm0, %v2591_v14, %v2592_v29  ;;  %v2598_v42 = vsel %vm86_vm0, %v2592_v29, %v2593_v15 }
 0x4fb   :  { %v2597_v43 = vsel %vm773_vm5, %v2585_v16, %v2596_v28  ;;  %v2599_v47 = vsel %vm773_vm5, %v2587_v38, %v2598_v42 }
 0x4fc   :  { %2604 = vst [vmem:[#allocation2 + $0x8] sm:$0xff] %v2597_v43 }
 0x4fd   :  { %2605 = vst [vmem:[#allocation2 + $0x10] sm:$0xff] %v2599_v47 }
 0x4fe   :  { %2616 = dma.vmem_to_hbm [thread:$0]  %s2612_s1, 384, %s2614_s11, [#allocation3]  }
 0x4ff   :  { %2846 = dma.done.wait [#allocation3], 384  }
 0x500   :  { %2847 = vsyncadd [#allocation3], 4294966912 }
 0x501   :  { %2621 = vsyncpa [#allocation3], 1 }

</bundles_post_ra>
